<compile_context>
chip_gen: v6e
topology: v6e:2x2x1
jax: 0.10.0
libtpu: 0.0.40
codegen_flags: <defaults>
</compile_context>

<pallas_src>
import math
import functools

import jax
import jax.numpy as jnp
from jax import lax
from jax.experimental import pallas as pl
from jax.experimental.pallas import tpu as pltpu

EPS = 1e-5
NEG_BIG = -1e30                      # large finite negative (NaN-safe masking)
_GELU_C = math.sqrt(2.0 / math.pi)


def _layernorm(v, w, b):
    # PyTorch LayerNorm semantics: biased variance over the last dim.
    mean = jnp.mean(v, axis=-1, keepdims=True)
    var = jnp.mean((v - mean) ** 2, axis=-1, keepdims=True)
    inv = lax.rsqrt(var + EPS)       # EUP rsqrt instead of VPU divide
    return (v - mean) * inv * w + b


def _gelu_tanh(x):
    # GELU(approximate='tanh'); x*x*x guarantees pure mul lowering (no pow).
    return 0.5 * x * (1.0 + jnp.tanh(_GELU_C * (x + 0.044715 * (x * x * x))))


def decoder_kernel(x_ref, ln1w_ref, ln1b_ref, wq_ref, wk_ref, wv_ref, wo_ref,
                   ln2w_ref, ln2b_ref, w1t_ref, b1_ref, w2t_ref, b2_ref,
                   o_ref,
                   k_cache, v_cache, q_tile, m_sc, l_sc, acc_sc,
                   *, num_heads, head_size, block_q, block_k, cache_chunk,
                   ff_chunk):
    bf16 = jnp.bfloat16
    f32 = jnp.float32
    S = x_ref.shape[1]
    D = num_heads * head_size
    d_ff = w1t_ref.shape[1]

    ln1w = ln1w_ref[0]
    ln1b = ln1b_ref[0]

    # ---- per-batch K/V cache (built once per batch row; q axis is "arbitrary") ----
    @pl.when(pl.program_id(1) == 0)
    def _build_kv_cache():
        for s0 in range(0, S, cache_chunk):          # row-chunked: no (S,D) live tensor
            xc = x_ref[0, s0:s0 + cache_chunk, :]
            yc = _layernorm(xc, ln1w, ln1b).astype(bf16)
            for h in range(num_heads):                # leading-dim writes, no lane slicing
                k_cache[h, s0:s0 + cache_chunk, :] = jnp.dot(
                    yc, wk_ref[h], preferred_element_type=f32).astype(bf16)
                v_cache[h, s0:s0 + cache_chunk, :] = jnp.dot(
                    yc, wv_ref[h], preferred_element_type=f32).astype(bf16)

    # ---- Q projection for this query tile (1/sqrt(head_size) folded into wq) ----
    q_start = pl.multiple_of(pl.program_id(1) * block_q, block_q)
    x_q = x_ref[0, pl.ds(q_start, block_q), :]        # (TQ, D) f32
    y_q = _layernorm(x_q, ln1w, ln1b).astype(bf16)
    for h in range(num_heads):
        q_tile[h] = jnp.dot(y_q, wq_ref[h],
                            preferred_element_type=f32).astype(bf16)
    q_heads = q_tile[...]                             # (H, TQ, hd) bf16

    # ---- flash-style causal attention over kv tiles (online softmax) ----
    m_sc[...] = jnp.full(m_sc.shape, NEG_BIG, f32)
    l_sc[...] = jnp.zeros(l_sc.shape, f32)
    acc_sc[...] = jnp.zeros(acc_sc.shape, f32)

    row_ids = lax.broadcasted_iota(
        jnp.int32, (num_heads, block_q, block_k), 1) + q_start
    col_base = lax.broadcasted_iota(
        jnp.int32, (num_heads, block_q, block_k), 2)

    def kv_step(kv_off):                              # kv_off is a static python int
        k_t = k_cache[:, kv_off:kv_off + block_k, :]  # (H, TK, hd) bf16
        v_t = v_cache[:, kv_off:kv_off + block_k, :]
        s = jnp.einsum('hqd,hkd->hqk', q_heads, k_t,
                       preferred_element_type=f32)    # (H, TQ, TK) f32
        s = jnp.where(col_base + kv_off > row_ids, NEG_BIG, s)
        m_prev = m_sc[...]
        m_new = jnp.maximum(m_prev, jnp.max(s, axis=-1, keepdims=True))
        alpha = jnp.exp(m_prev - m_new)
        p = jnp.exp(s - m_new)
        l_sc[...] = alpha * l_sc[...] + jnp.sum(p, axis=-1, keepdims=True)
        acc_sc[...] = alpha * acc_sc[...] + jnp.einsum(
            'hqk,hkd->hqd', p.astype(bf16), v_t, preferred_element_type=f32)
        m_sc[...] = m_new

    q_last = q_start + block_q - 1
    for kvi in range(S // block_k):
        kv_off = kvi * block_k
        if kvi == 0:
            kv_step(0)                                # first tile is always needed
        else:
            @pl.when(kv_off <= q_last)                # skip tiles above the diagonal
            def _(kv_off=kv_off):
                kv_step(kv_off)

    attn = acc_sc[...] * pl.reciprocal(l_sc[...], approx=True)   # (H, TQ, hd)

    # ---- concat(heads) @ Wo as per-head accumulation (no lane-axis concat) ----
    attn_out = jnp.zeros((block_q, D), f32)
    for h in range(num_heads):
        attn_out = attn_out + jnp.dot(attn[h].astype(bf16), wo_ref[h],
                                      preferred_element_type=f32)

    z = x_q + attn_out                                # residual (dropout = identity)

    # ---- fully-connected sublayer, chunked over d_ff ----
    # TODO(synk): stream w1t/w2t chunks from HBM (emit_pipeline) when d_ff is
    # too large for resident VMEM weights (v7x, 64 MiB).
    y2 = _layernorm(z, ln2w_ref[0], ln2b_ref[0]).astype(bf16)
    h2 = jnp.zeros((block_q, D), f32)
    for c0 in range(0, d_ff, ff_chunk):
        h1c = jnp.dot(y2, w1t_ref[:, c0:c0 + ff_chunk],
                      preferred_element_type=f32) + b1_ref[0, c0:c0 + ff_chunk]
        h1c = _gelu_tanh(h1c)
        h2 = h2 + jnp.dot(h1c.astype(bf16), w2t_ref[c0:c0 + ff_chunk, :],
                          preferred_element_type=f32)

    o_ref[0] = z + h2 + b2_ref[0]


def _pick_tile(n, candidates):
    for c in candidates:
        if c <= n and n % c == 0:
            return c
    return n


def _vmem_capacity_bytes():
    try:
        cap = getattr(pltpu.get_tpu_info(), "vmem_capacity_bytes", None)
        if cap:
            return int(cap)
    except Exception:
        pass
    return 64 * 1024 * 1024          # conservative default (v7x per-core VMEM)


def decoder_forward(x, params, *, num_heads, block_q=None, block_k=None):
    B, S, D = x.shape
    head_size = D // num_heads
    d_ff = params['w1'].shape[0]
    if block_q is None:
        block_q = _pick_tile(S, (256, 128, 64, 32, 16, 8))
    if block_k is None:
        # multiples of 16 keep static bf16 cache slices tile-aligned
        block_k = _pick_tile(S, (256, 128, 64, 32, 16))
    cache_chunk = _pick_tile(S, (512, 256, 128, 64, 32, 16))
    ff_chunk = _pick_tile(d_ff, (512, 256, 128))
    nq = S // block_q
    scale = 1.0 / math.sqrt(head_size)
    bf16 = jnp.bfloat16

    # --- host-side weight prep: per-head slabs, bf16, scale folded into wq;
    #     wo reshaped to (H, hd, D) so its rows line up with the head-concat layout ---
    wq3 = (params['wq'] * scale).astype(bf16)          # (H, D, hd)
    wk3 = params['wk'].astype(bf16)                    # (H, D, hd)
    wv3 = params['wv'].astype(bf16)                    # (H, D, hd)
    wo3 = params['wo'].reshape(num_heads, head_size, D).astype(bf16)
    w1t = params['w1'].T.astype(bf16)                  # (D, F)
    w2t = params['w2'].T.astype(bf16)                  # (F, D)

    ln1w = params['ln1_w'].reshape(1, D)
    ln1b = params['ln1_b'].reshape(1, D)
    ln2w = params['ln2_w'].reshape(1, D)
    ln2b = params['ln2_b'].reshape(1, D)
    b1 = params['b1'].reshape(1, d_ff)
    b2 = params['b2'].reshape(1, D)

    full2 = lambda b, q: (0, 0)
    full3 = lambda b, q: (0, 0, 0)

    grid_spec = pltpu.PrefetchScalarGridSpec(
        num_scalar_prefetch=0,
        grid=(B, nq),
        in_specs=[
            pl.BlockSpec((1, S, D), lambda b, q: (b, 0, 0)),        # x (full seq row)
            pl.BlockSpec((1, D), full2),                            # ln1_w
            pl.BlockSpec((1, D), full2),                            # ln1_b
            pl.BlockSpec((num_heads, D, head_size), full3),         # wq (scaled)
            pl.BlockSpec((num_heads, D, head_size), full3),         # wk
            pl.BlockSpec((num_heads, D, head_size), full3),         # wv
            pl.BlockSpec((num_heads, head_size, D), full3),         # wo
            pl.BlockSpec((1, D), full2),                            # ln2_w
            pl.BlockSpec((1, D), full2),                            # ln2_b
            pl.BlockSpec((D, d_ff), full2),                         # w1^T
            pl.BlockSpec((1, d_ff), full2),                         # b1
            pl.BlockSpec((d_ff, D), full2),                         # w2^T
            pl.BlockSpec((1, D), full2),                            # b2
        ],
        out_specs=pl.BlockSpec((1, block_q, D), lambda b, q: (b, q, 0)),
        scratch_shapes=[
            pltpu.VMEM((num_heads, S, head_size), bf16),            # K cache
            pltpu.VMEM((num_heads, S, head_size), bf16),            # V cache
            pltpu.VMEM((num_heads, block_q, head_size), bf16),      # Q tile
            pltpu.VMEM((num_heads, block_q, 1), jnp.float32),       # running max
            pltpu.VMEM((num_heads, block_q, 1), jnp.float32),       # running sum
            pltpu.VMEM((num_heads, block_q, head_size), jnp.float32),  # acc
        ],
    )

    # --- advisory cost (reflects per-batch KV caching + causal halving) ---
    flops = (4 * B * S * D * D           # K/V projections (once per batch row)
             + 2 * B * S * D * D         # Q projection
             + 2 * B * S * S * D         # causal scores + attn @ V
             + 2 * B * S * D * D         # output projection
             + 4 * B * S * D * d_ff)     # FFN
    transcendentals = B * num_heads * S * S // 2 + B * S * d_ff + 4 * B * S
    bytes_accessed = (2 * B * S * D * 4
                      + (4 * D * D + 2 * D * d_ff) * 2
                      + (6 * D + d_ff) * 4)
    cost = pl.CostEstimate(flops=int(flops), transcendentals=int(transcendentals),
                           bytes_accessed=int(bytes_accessed))

    # --- scoped-VMEM budget: actual footprint, clamped per TPU generation ---
    pad = lambda v, m: ((v + m - 1) // m) * m
    hd_l, d_l, f_l = pad(head_size, 128), pad(D, 128), pad(d_ff, 128)
    weight_bytes = 2 * (3 * num_heads * D * hd_l
                        + num_heads * pad(head_size, 16) * d_l
                        + D * f_l + pad(d_ff, 16) * d_l)
    small_bytes = 4 * 8 * (5 * d_l + f_l)
    act_bytes = 4 * (S * d_l + block_q * d_l)
    scratch_bytes = (2 * num_heads * (2 * pad(S, 16) + pad(block_q, 16)) * hd_l
                     + 4 * num_heads * pad(block_q, 8) * (hd_l + 2 * 128))
    vmem_needed = 2 * (weight_bytes + small_bytes + act_bytes) + scratch_bytes
    vmem_needed = int(1.5 * vmem_needed) + (16 << 20)   # headroom
    vmem_limit = int(max(32 << 20,
                         min(vmem_needed, int(0.85 * _vmem_capacity_bytes()))))

    return pl.pallas_call(
        functools.partial(decoder_kernel, num_heads=num_heads,
                          head_size=head_size, block_q=block_q, block_k=block_k,
                          cache_chunk=cache_chunk, ff_chunk=ff_chunk),
        out_shape=jax.ShapeDtypeStruct((B, S, D), jnp.float32),
        grid_spec=grid_spec,
        compiler_params=pltpu.CompilerParams(
            # batch = leading "parallel" axis (megacore); q axis = "arbitrary"
            # so the per-batch KV scratch persists across q steps.
            dimension_semantics=("parallel", "arbitrary"),
            vmem_limit_bytes=vmem_limit),
        cost_estimate=cost,
    )(x, ln1w, ln1b, wq3, wk3, wv3, wo3, ln2w, ln2b, w1t, b1, w2t, b2)


def decoder_reference(x, params, *, num_heads):
    """Plain-JAX f32 reference mirroring the PyTorch module (eval / p_drop=0)."""
    D = x.shape[-1]
    head_size = D // num_heads

    def layernorm(v, w, b):
        mean = jnp.mean(v, axis=-1, keepdims=True)
        var = jnp.mean((v - mean) ** 2, axis=-1, keepdims=True)
        return (v - mean) * w / jnp.sqrt(var + EPS) + b

    y = layernorm(x, params['ln1_w'], params['ln1_b'])
    q = jnp.einsum('bsd,hdk->bhsk', y, params['wq'])
    k = jnp.einsum('bsd,hdk->bhsk', y, params['wk'])
    v = jnp.einsum('bsd,hdk->bhsk', y, params['wv'])
    scores = jnp.einsum('bhsk,bhtk->bhst', q, k) / math.sqrt(head_size)
    S = x.shape[1]
    mask = jnp.triu(jnp.full((S, S), -jnp.inf), 1)
    scores = scores + mask
    w = jax.nn.softmax(scores, axis=-1)
    attn = jnp.einsum('bhst,bhtk->bhsk', w, v)
    attn = jnp.transpose(attn, (0, 2, 1, 3)).reshape(x.shape[0], S, D)
    attn_out = attn @ params['wo']
    z = x + attn_out

    y2 = layernorm(z, params['ln2_w'], params['ln2_b'])
    h1 = y2 @ params['w1'].T + params['b1']
    h1 = 0.5 * h1 * (1 + jnp.tanh(math.sqrt(2 / math.pi) * (h1 + 0.044715 * h1 ** 3)))
    h2 = h1 @ params['w2'].T + params['b2']
    return z + h2


def init_params(key, d_model, num_heads, d_ff):
    head_size = d_model // num_heads
    k_attn = 1.0 / math.sqrt(d_model)
    k_l1 = 1.0 / math.sqrt(d_model)
    k_l2 = 1.0 / math.sqrt(d_ff)
    keys = jax.random.split(key, 8)
    u = lambda kk, shape, lim: jax.random.uniform(
        kk, shape, jnp.float32, minval=-lim, maxval=lim)
    return {
        'ln1_w': jnp.ones((d_model,), jnp.float32),
        'ln1_b': jnp.zeros((d_model,), jnp.float32),
        'wq': u(keys[0], (num_heads, d_model, head_size), k_attn),
        'wk': u(keys[1], (num_heads, d_model, head_size), k_attn),
        'wv': u(keys[2], (num_heads, d_model, head_size), k_attn),
        'wo': u(keys[3], (d_model, d_model), k_attn),
        'ln2_w': jnp.ones((d_model,), jnp.float32),
        'ln2_b': jnp.zeros((d_model,), jnp.float32),
        'w1': u(keys[4], (d_ff, d_model), k_l1),
        'b1': u(keys[5], (d_ff,), k_l1),
        'w2': u(keys[6], (d_model, d_ff), k_l2),
        'b2': u(keys[7], (d_model,), k_l2),
    }


if __name__ == "__main__":
    # TODO(synk): Dropout is identity (inference mode / p=0.0); training-mode
    # in-place masking is not implemented.
    key = jax.random.PRNGKey(0)

    # Test 1: small shapes implied by the module (single q tile / single kv tile).
    B, S, D, H, F = 2, 8, 128, 4, 256
    kx, kp = jax.random.split(key)
    x = jax.random.normal(kx, (B, S, D), jnp.float32)
    params = init_params(kp, D, H, F)
    out = jax.block_until_ready(decoder_forward(x, params, num_heads=H))
    ref = decoder_reference(x, params, num_heads=H)
    assert out.shape == (B, S, D)
    # bf16 matmul inputs + approx reciprocal -> bf16-level tolerance
    assert jnp.allclose(out, ref, rtol=2e-2, atol=2e-2), "mismatch vs reference (S=8)"

    # Test 2: multiple query tiles + causal kv-tile skipping; exercises the
    # per-batch KV cache persisting across q grid steps.
    B2, S2 = 2, 64
    kx2, kp2 = jax.random.split(kp)
    x2 = jax.random.normal(kx2, (B2, S2, D), jnp.float32)
    params2 = init_params(kp2, D, H, F)
    out2 = jax.block_until_ready(
        decoder_forward(x2, params2, num_heads=H, block_q=32, block_k=16))
    ref2 = decoder_reference(x2, params2, num_heads=H)
    assert jnp.allclose(out2, ref2, rtol=2e-2, atol=2e-2), "mismatch vs reference (S=64)"

    print("KERNEL_OK")
</pallas_src>

<mosaic_0001>
module attributes {stable_mosaic.version = 11 : i64} {
  func.func @decoder_kernel(%arg0: i32, %arg1: i32, %arg2: memref<1x8x128xf32, #tpu.memory_space<vmem>>, %arg3: memref<1x128xf32, #tpu.memory_space<vmem>>, %arg4: memref<1x128xf32, #tpu.memory_space<vmem>>, %arg5: memref<4x128x32xbf16, #tpu.memory_space<vmem>>, %arg6: memref<4x128x32xbf16, #tpu.memory_space<vmem>>, %arg7: memref<4x128x32xbf16, #tpu.memory_space<vmem>>, %arg8: memref<4x32x128xbf16, #tpu.memory_space<vmem>>, %arg9: memref<1x128xf32, #tpu.memory_space<vmem>>, %arg10: memref<1x128xf32, #tpu.memory_space<vmem>>, %arg11: memref<128x256xbf16, #tpu.memory_space<vmem>>, %arg12: memref<1x256xf32, #tpu.memory_space<vmem>>, %arg13: memref<256x128xbf16, #tpu.memory_space<vmem>>, %arg14: memref<1x128xf32, #tpu.memory_space<vmem>>, %arg15: memref<1x8x128xf32, #tpu.memory_space<vmem>>, %arg16: memref<4x8x32xbf16, #tpu.memory_space<vmem>>, %arg17: memref<4x8x32xbf16, #tpu.memory_space<vmem>>, %arg18: memref<4x8x32xbf16, #tpu.memory_space<vmem>>, %arg19: memref<4x8x1xf32, #tpu.memory_space<vmem>>, %arg20: memref<4x8x1xf32, #tpu.memory_space<vmem>>, %arg21: memref<4x8x32xf32, #tpu.memory_space<vmem>>) attributes {dimension_semantics = [#tpu.dimension_semantics<parallel>, #tpu.dimension_semantics<arbitrary>], iteration_bounds = array<i64: 2, 1>, scalar_prefetch = 0 : i64, scratch_operands = 6 : i64, tpu.core_type = #tpu.core_type<tc>, window_params = [{transform_indices = @transform_0, window_bounds = array<i64: 1, 8, 128>}, {pipeline_mode = #tpu.pipeline_mode<synchronous>, transform_indices = @transform_1, window_bounds = array<i64: 1, 128>}, {pipeline_mode = #tpu.pipeline_mode<synchronous>, transform_indices = @transform_2, window_bounds = array<i64: 1, 128>}, {pipeline_mode = #tpu.pipeline_mode<synchronous>, transform_indices = @transform_3, window_bounds = array<i64: 4, 128, 32>}, {pipeline_mode = #tpu.pipeline_mode<synchronous>, transform_indices = @transform_4, window_bounds = array<i64: 4, 128, 32>}, {pipeline_mode = #tpu.pipeline_mode<synchronous>, transform_indices = @transform_5, window_bounds = array<i64: 4, 128, 32>}, {pipeline_mode = #tpu.pipeline_mode<synchronous>, transform_indices = @transform_6, window_bounds = array<i64: 4, 32, 128>}, {pipeline_mode = #tpu.pipeline_mode<synchronous>, transform_indices = @transform_7, window_bounds = array<i64: 1, 128>}, {pipeline_mode = #tpu.pipeline_mode<synchronous>, transform_indices = @transform_8, window_bounds = array<i64: 1, 128>}, {pipeline_mode = #tpu.pipeline_mode<synchronous>, transform_indices = @transform_9, window_bounds = array<i64: 128, 256>}, {pipeline_mode = #tpu.pipeline_mode<synchronous>, transform_indices = @transform_10, window_bounds = array<i64: 1, 256>}, {pipeline_mode = #tpu.pipeline_mode<synchronous>, transform_indices = @transform_11, window_bounds = array<i64: 256, 128>}, {pipeline_mode = #tpu.pipeline_mode<synchronous>, transform_indices = @transform_12, window_bounds = array<i64: 1, 128>}, {transform_indices = @transform_13, window_bounds = array<i64: 1, 8, 128>}]} {
    %c0 = arith.constant 0 : index
    %c0_0 = arith.constant 0 : index
    %0 = vector.load %arg3[%c0, %c0_0] : memref<1x128xf32, #tpu.memory_space<vmem>>, vector<1x128xf32>
    %1 = vector.shape_cast %0 : vector<1x128xf32> to vector<128xf32>
    %c0_1 = arith.constant 0 : index
    %c0_2 = arith.constant 0 : index
    %2 = vector.load %arg4[%c0_1, %c0_2] : memref<1x128xf32, #tpu.memory_space<vmem>>, vector<1x128xf32>
    %3 = vector.shape_cast %2 : vector<1x128xf32> to vector<128xf32>
    %c0_i32 = arith.constant 0 : i32
    %4 = arith.cmpi eq, %arg1, %c0_i32 : i32
    %5 = arith.extui %4 : i1 to i32
    %c0_i32_3 = arith.constant 0 : i32
    %6 = arith.cmpi ne, %5, %c0_i32_3 : i32
    scf.if %6 {
      %c0_130 = arith.constant 0 : index
      %c0_131 = arith.constant 0 : index
      %c0_132 = arith.constant 0 : index
      %205 = vector.load %arg2[%c0_130, %c0_131, %c0_132] : memref<1x8x128xf32, #tpu.memory_space<vmem>>, vector<1x8x128xf32>
      %206 = vector.shape_cast %205 : vector<1x8x128xf32> to vector<8x128xf32>
      %cst_133 = arith.constant dense<0.000000e+00> : vector<8xf32>
      %207 = vector.multi_reduction <add>, %206, %cst_133 [1] : vector<8x128xf32> to vector<8xf32>
      %208 = vector.shape_cast %207 : vector<8xf32> to vector<8x1xf32>
      %cst_134 = arith.constant 1.280000e+02 : f32
      %209 = vector.broadcast %cst_134 : f32 to vector<8x1xf32>
      %210 = arith.divf %208, %209 : vector<8x1xf32>
      %211 = vector.broadcast %210 : vector<8x1xf32> to vector<8x128xf32>
      %212 = arith.subf %206, %211 : vector<8x128xf32>
      %213 = arith.mulf %212, %212 : vector<8x128xf32>
      %cst_135 = arith.constant dense<0.000000e+00> : vector<8xf32>
      %214 = vector.multi_reduction <add>, %213, %cst_135 [1] : vector<8x128xf32> to vector<8xf32>
      %215 = vector.shape_cast %214 : vector<8xf32> to vector<8x1xf32>
      %cst_136 = arith.constant 1.280000e+02 : f32
      %216 = vector.broadcast %cst_136 : f32 to vector<8x1xf32>
      %217 = arith.divf %215, %216 : vector<8x1xf32>
      %cst_137 = arith.constant 9.99999974E-6 : f32
      %218 = vector.broadcast %cst_137 : f32 to vector<8x1xf32>
      %219 = arith.addf %217, %218 : vector<8x1xf32>
      %220 = math.rsqrt %219 : vector<8x1xf32>
      %221 = vector.broadcast %210 : vector<8x1xf32> to vector<8x128xf32>
      %222 = arith.subf %206, %221 : vector<8x128xf32>
      %223 = vector.broadcast %220 : vector<8x1xf32> to vector<8x128xf32>
      %224 = arith.mulf %222, %223 : vector<8x128xf32>
      %225 = vector.shape_cast %1 : vector<128xf32> to vector<1x128xf32>
      %226 = vector.broadcast %225 : vector<1x128xf32> to vector<8x128xf32>
      %227 = arith.mulf %224, %226 : vector<8x128xf32>
      %228 = vector.shape_cast %3 : vector<128xf32> to vector<1x128xf32>
      %229 = vector.broadcast %228 : vector<1x128xf32> to vector<8x128xf32>
      %230 = arith.addf %227, %229 : vector<8x128xf32>
      %231 = arith.truncf %230 : vector<8x128xf32> to vector<8x128xbf16>
      %c0_138 = arith.constant 0 : index
      %c0_139 = arith.constant 0 : index
      %c0_140 = arith.constant 0 : index
      %232 = vector.load %arg6[%c0_138, %c0_139, %c0_140] : memref<4x128x32xbf16, #tpu.memory_space<vmem>>, vector<1x128x32xbf16>
      %233 = vector.shape_cast %232 : vector<1x128x32xbf16> to vector<128x32xbf16>
      %cst_141 = arith.constant dense<0.000000e+00> : vector<8x32xf32>
      %234 = tpu.matmul %231, %233, %cst_141 {dimension_numbers = #tpu.dot_dimension_numbers<[1], [0], [0], [1], [0, 0, 1, 1], [], []>} : vector<8x128xbf16>, vector<128x32xbf16>, vector<8x32xf32> -> vector<8x32xf32>
      %235 = arith.truncf %234 : vector<8x32xf32> to vector<8x32xbf16>
      %c0_142 = arith.constant 0 : index
      %c0_143 = arith.constant 0 : index
      %c0_144 = arith.constant 0 : index
      %236 = vector.load %arg16[%c0_142, %c0_143, %c0_144] : memref<4x8x32xbf16, #tpu.memory_space<vmem>>, vector<1x8x32xbf16>
      %237 = vector.shape_cast %236 : vector<1x8x32xbf16> to vector<8x32xbf16>
      %238 = vector.shape_cast %235 : vector<8x32xbf16> to vector<1x8x32xbf16>
      tpu.vector_store %arg16[%c0_142, %c0_143, %c0_144], %238 {strides = array<i32>} : memref<4x8x32xbf16, #tpu.memory_space<vmem>>, vector<1x8x32xbf16>,
      %c0_145 = arith.constant 0 : index
      %c0_146 = arith.constant 0 : index
      %c0_147 = arith.constant 0 : index
      %239 = vector.load %arg7[%c0_145, %c0_146, %c0_147] : memref<4x128x32xbf16, #tpu.memory_space<vmem>>, vector<1x128x32xbf16>
      %240 = vector.shape_cast %239 : vector<1x128x32xbf16> to vector<128x32xbf16>
      %cst_148 = arith.constant dense<0.000000e+00> : vector<8x32xf32>
      %241 = tpu.matmul %231, %240, %cst_148 {dimension_numbers = #tpu.dot_dimension_numbers<[1], [0], [0], [1], [0, 0, 1, 1], [], []>} : vector<8x128xbf16>, vector<128x32xbf16>, vector<8x32xf32> -> vector<8x32xf32>
      %242 = arith.truncf %241 : vector<8x32xf32> to vector<8x32xbf16>
      %c0_149 = arith.constant 0 : index
      %c0_150 = arith.constant 0 : index
      %c0_151 = arith.constant 0 : index
      %243 = vector.load %arg17[%c0_149, %c0_150, %c0_151] : memref<4x8x32xbf16, #tpu.memory_space<vmem>>, vector<1x8x32xbf16>
      %244 = vector.shape_cast %243 : vector<1x8x32xbf16> to vector<8x32xbf16>
      %245 = vector.shape_cast %242 : vector<8x32xbf16> to vector<1x8x32xbf16>
      tpu.vector_store %arg17[%c0_149, %c0_150, %c0_151], %245 {strides = array<i32>} : memref<4x8x32xbf16, #tpu.memory_space<vmem>>, vector<1x8x32xbf16>,
      %c1_152 = arith.constant 1 : index
      %c0_153 = arith.constant 0 : index
      %c0_154 = arith.constant 0 : index
      %246 = vector.load %arg6[%c1_152, %c0_153, %c0_154] : memref<4x128x32xbf16, #tpu.memory_space<vmem>>, vector<1x128x32xbf16>
      %247 = vector.shape_cast %246 : vector<1x128x32xbf16> to vector<128x32xbf16>
      %cst_155 = arith.constant dense<0.000000e+00> : vector<8x32xf32>
      %248 = tpu.matmul %231, %247, %cst_155 {dimension_numbers = #tpu.dot_dimension_numbers<[1], [0], [0], [1], [0, 0, 1, 1], [], []>} : vector<8x128xbf16>, vector<128x32xbf16>, vector<8x32xf32> -> vector<8x32xf32>
      %249 = arith.truncf %248 : vector<8x32xf32> to vector<8x32xbf16>
      %c1_156 = arith.constant 1 : index
      %c0_157 = arith.constant 0 : index
      %c0_158 = arith.constant 0 : index
      %250 = vector.load %arg16[%c1_156, %c0_157, %c0_158] : memref<4x8x32xbf16, #tpu.memory_space<vmem>>, vector<1x8x32xbf16>
      %251 = vector.shape_cast %250 : vector<1x8x32xbf16> to vector<8x32xbf16>
      %252 = vector.shape_cast %249 : vector<8x32xbf16> to vector<1x8x32xbf16>
      tpu.vector_store %arg16[%c1_156, %c0_157, %c0_158], %252 {strides = array<i32>} : memref<4x8x32xbf16, #tpu.memory_space<vmem>>, vector<1x8x32xbf16>,
      %c1_159 = arith.constant 1 : index
      %c0_160 = arith.constant 0 : index
      %c0_161 = arith.constant 0 : index
      %253 = vector.load %arg7[%c1_159, %c0_160, %c0_161] : memref<4x128x32xbf16, #tpu.memory_space<vmem>>, vector<1x128x32xbf16>
      %254 = vector.shape_cast %253 : vector<1x128x32xbf16> to vector<128x32xbf16>
      %cst_162 = arith.constant dense<0.000000e+00> : vector<8x32xf32>
      %255 = tpu.matmul %231, %254, %cst_162 {dimension_numbers = #tpu.dot_dimension_numbers<[1], [0], [0], [1], [0, 0, 1, 1], [], []>} : vector<8x128xbf16>, vector<128x32xbf16>, vector<8x32xf32> -> vector<8x32xf32>
      %256 = arith.truncf %255 : vector<8x32xf32> to vector<8x32xbf16>
      %c1_163 = arith.constant 1 : index
      %c0_164 = arith.constant 0 : index
      %c0_165 = arith.constant 0 : index
      %257 = vector.load %arg17[%c1_163, %c0_164, %c0_165] : memref<4x8x32xbf16, #tpu.memory_space<vmem>>, vector<1x8x32xbf16>
      %258 = vector.shape_cast %257 : vector<1x8x32xbf16> to vector<8x32xbf16>
      %259 = vector.shape_cast %256 : vector<8x32xbf16> to vector<1x8x32xbf16>
      tpu.vector_store %arg17[%c1_163, %c0_164, %c0_165], %259 {strides = array<i32>} : memref<4x8x32xbf16, #tpu.memory_space<vmem>>, vector<1x8x32xbf16>,
      %c2_166 = arith.constant 2 : index
      %c0_167 = arith.constant 0 : index
      %c0_168 = arith.constant 0 : index
      %260 = vector.load %arg6[%c2_166, %c0_167, %c0_168] : memref<4x128x32xbf16, #tpu.memory_space<vmem>>, vector<1x128x32xbf16>
      %261 = vector.shape_cast %260 : vector<1x128x32xbf16> to vector<128x32xbf16>
      %cst_169 = arith.constant dense<0.000000e+00> : vector<8x32xf32>
      %262 = tpu.matmul %231, %261, %cst_169 {dimension_numbers = #tpu.dot_dimension_numbers<[1], [0], [0], [1], [0, 0, 1, 1], [], []>} : vector<8x128xbf16>, vector<128x32xbf16>, vector<8x32xf32> -> vector<8x32xf32>
      %263 = arith.truncf %262 : vector<8x32xf32> to vector<8x32xbf16>
      %c2_170 = arith.constant 2 : index
      %c0_171 = arith.constant 0 : index
      %c0_172 = arith.constant 0 : index
      %264 = vector.load %arg16[%c2_170, %c0_171, %c0_172] : memref<4x8x32xbf16, #tpu.memory_space<vmem>>, vector<1x8x32xbf16>
      %265 = vector.shape_cast %264 : vector<1x8x32xbf16> to vector<8x32xbf16>
      %266 = vector.shape_cast %263 : vector<8x32xbf16> to vector<1x8x32xbf16>
      tpu.vector_store %arg16[%c2_170, %c0_171, %c0_172], %266 {strides = array<i32>} : memref<4x8x32xbf16, #tpu.memory_space<vmem>>, vector<1x8x32xbf16>,
      %c2_173 = arith.constant 2 : index
      %c0_174 = arith.constant 0 : index
      %c0_175 = arith.constant 0 : index
      %267 = vector.load %arg7[%c2_173, %c0_174, %c0_175] : memref<4x128x32xbf16, #tpu.memory_space<vmem>>, vector<1x128x32xbf16>
      %268 = vector.shape_cast %267 : vector<1x128x32xbf16> to vector<128x32xbf16>
      %cst_176 = arith.constant dense<0.000000e+00> : vector<8x32xf32>
      %269 = tpu.matmul %231, %268, %cst_176 {dimension_numbers = #tpu.dot_dimension_numbers<[1], [0], [0], [1], [0, 0, 1, 1], [], []>} : vector<8x128xbf16>, vector<128x32xbf16>, vector<8x32xf32> -> vector<8x32xf32>
      %270 = arith.truncf %269 : vector<8x32xf32> to vector<8x32xbf16>
      %c2_177 = arith.constant 2 : index
      %c0_178 = arith.constant 0 : index
      %c0_179 = arith.constant 0 : index
      %271 = vector.load %arg17[%c2_177, %c0_178, %c0_179] : memref<4x8x32xbf16, #tpu.memory_space<vmem>>, vector<1x8x32xbf16>
      %272 = vector.shape_cast %271 : vector<1x8x32xbf16> to vector<8x32xbf16>
      %273 = vector.shape_cast %270 : vector<8x32xbf16> to vector<1x8x32xbf16>
      tpu.vector_store %arg17[%c2_177, %c0_178, %c0_179], %273 {strides = array<i32>} : memref<4x8x32xbf16, #tpu.memory_space<vmem>>, vector<1x8x32xbf16>,
      %c3_180 = arith.constant 3 : index
      %c0_181 = arith.constant 0 : index
      %c0_182 = arith.constant 0 : index
      %274 = vector.load %arg6[%c3_180, %c0_181, %c0_182] : memref<4x128x32xbf16, #tpu.memory_space<vmem>>, vector<1x128x32xbf16>
      %275 = vector.shape_cast %274 : vector<1x128x32xbf16> to vector<128x32xbf16>
      %cst_183 = arith.constant dense<0.000000e+00> : vector<8x32xf32>
      %276 = tpu.matmul %231, %275, %cst_183 {dimension_numbers = #tpu.dot_dimension_numbers<[1], [0], [0], [1], [0, 0, 1, 1], [], []>} : vector<8x128xbf16>, vector<128x32xbf16>, vector<8x32xf32> -> vector<8x32xf32>
      %277 = arith.truncf %276 : vector<8x32xf32> to vector<8x32xbf16>
      %c3_184 = arith.constant 3 : index
      %c0_185 = arith.constant 0 : index
      %c0_186 = arith.constant 0 : index
      %278 = vector.load %arg16[%c3_184, %c0_185, %c0_186] : memref<4x8x32xbf16, #tpu.memory_space<vmem>>, vector<1x8x32xbf16>
      %279 = vector.shape_cast %278 : vector<1x8x32xbf16> to vector<8x32xbf16>
      %280 = vector.shape_cast %277 : vector<8x32xbf16> to vector<1x8x32xbf16>
      tpu.vector_store %arg16[%c3_184, %c0_185, %c0_186], %280 {strides = array<i32>} : memref<4x8x32xbf16, #tpu.memory_space<vmem>>, vector<1x8x32xbf16>,
      %c3_187 = arith.constant 3 : index
      %c0_188 = arith.constant 0 : index
      %c0_189 = arith.constant 0 : index
      %281 = vector.load %arg7[%c3_187, %c0_188, %c0_189] : memref<4x128x32xbf16, #tpu.memory_space<vmem>>, vector<1x128x32xbf16>
      %282 = vector.shape_cast %281 : vector<1x128x32xbf16> to vector<128x32xbf16>
      %cst_190 = arith.constant dense<0.000000e+00> : vector<8x32xf32>
      %283 = tpu.matmul %231, %282, %cst_190 {dimension_numbers = #tpu.dot_dimension_numbers<[1], [0], [0], [1], [0, 0, 1, 1], [], []>} : vector<8x128xbf16>, vector<128x32xbf16>, vector<8x32xf32> -> vector<8x32xf32>
      %284 = arith.truncf %283 : vector<8x32xf32> to vector<8x32xbf16>
      %c3_191 = arith.constant 3 : index
      %c0_192 = arith.constant 0 : index
      %c0_193 = arith.constant 0 : index
      %285 = vector.load %arg17[%c3_191, %c0_192, %c0_193] : memref<4x8x32xbf16, #tpu.memory_space<vmem>>, vector<1x8x32xbf16>
      %286 = vector.shape_cast %285 : vector<1x8x32xbf16> to vector<8x32xbf16>
      %287 = vector.shape_cast %284 : vector<8x32xbf16> to vector<1x8x32xbf16>
      tpu.vector_store %arg17[%c3_191, %c0_192, %c0_193], %287 {strides = array<i32>} : memref<4x8x32xbf16, #tpu.memory_space<vmem>>, vector<1x8x32xbf16>,
    } else {
    }
    %c8_i32 = arith.constant 8 : i32
    %7 = arith.muli %arg1, %c8_i32 : i32
    %8 = tpu.assume_multiple %7, 8 : i32
    %c0_4 = arith.constant 0 : index
    %9 = arith.index_cast %8 : i32 to index
    %c0_5 = arith.constant 0 : index
    %10 = vector.load %arg2[%c0_4, %9, %c0_5] : memref<1x8x128xf32, #tpu.memory_space<vmem>>, vector<1x8x128xf32>
    %11 = vector.shape_cast %10 : vector<1x8x128xf32> to vector<8x128xf32>
    %cst = arith.constant dense<0.000000e+00> : vector<8xf32>
    %12 = vector.multi_reduction <add>, %11, %cst [1] : vector<8x128xf32> to vector<8xf32>
    %13 = vector.shape_cast %12 : vector<8xf32> to vector<8x1xf32>
    %cst_6 = arith.constant 1.280000e+02 : f32
    %14 = vector.broadcast %cst_6 : f32 to vector<8x1xf32>
    %15 = arith.divf %13, %14 : vector<8x1xf32>
    %16 = vector.broadcast %15 : vector<8x1xf32> to vector<8x128xf32>
    %17 = arith.subf %11, %16 : vector<8x128xf32>
    %18 = arith.mulf %17, %17 : vector<8x128xf32>
    %cst_7 = arith.constant dense<0.000000e+00> : vector<8xf32>
    %19 = vector.multi_reduction <add>, %18, %cst_7 [1] : vector<8x128xf32> to vector<8xf32>
    %20 = vector.shape_cast %19 : vector<8xf32> to vector<8x1xf32>
    %cst_8 = arith.constant 1.280000e+02 : f32
    %21 = vector.broadcast %cst_8 : f32 to vector<8x1xf32>
    %22 = arith.divf %20, %21 : vector<8x1xf32>
    %cst_9 = arith.constant 9.99999974E-6 : f32
    %23 = vector.broadcast %cst_9 : f32 to vector<8x1xf32>
    %24 = arith.addf %22, %23 : vector<8x1xf32>
    %25 = math.rsqrt %24 : vector<8x1xf32>
    %26 = vector.broadcast %15 : vector<8x1xf32> to vector<8x128xf32>
    %27 = arith.subf %11, %26 : vector<8x128xf32>
    %28 = vector.broadcast %25 : vector<8x1xf32> to vector<8x128xf32>
    %29 = arith.mulf %27, %28 : vector<8x128xf32>
    %30 = vector.shape_cast %1 : vector<128xf32> to vector<1x128xf32>
    %31 = vector.broadcast %30 : vector<1x128xf32> to vector<8x128xf32>
    %32 = arith.mulf %29, %31 : vector<8x128xf32>
    %33 = vector.shape_cast %3 : vector<128xf32> to vector<1x128xf32>
    %34 = vector.broadcast %33 : vector<1x128xf32> to vector<8x128xf32>
    %35 = arith.addf %32, %34 : vector<8x128xf32>
    %36 = arith.truncf %35 : vector<8x128xf32> to vector<8x128xbf16>
    %c0_10 = arith.constant 0 : index
    %c0_11 = arith.constant 0 : index
    %c0_12 = arith.constant 0 : index
    %37 = vector.load %arg5[%c0_10, %c0_11, %c0_12] : memref<4x128x32xbf16, #tpu.memory_space<vmem>>, vector<1x128x32xbf16>
    %38 = vector.shape_cast %37 : vector<1x128x32xbf16> to vector<128x32xbf16>
    %cst_13 = arith.constant dense<0.000000e+00> : vector<8x32xf32>
    %39 = tpu.matmul %36, %38, %cst_13 {dimension_numbers = #tpu.dot_dimension_numbers<[1], [0], [0], [1], [0, 0, 1, 1], [], []>} : vector<8x128xbf16>, vector<128x32xbf16>, vector<8x32xf32> -> vector<8x32xf32>
    %40 = arith.truncf %39 : vector<8x32xf32> to vector<8x32xbf16>
    %c0_14 = arith.constant 0 : index
    %c0_15 = arith.constant 0 : index
    %c0_16 = arith.constant 0 : index
    %41 = vector.load %arg18[%c0_14, %c0_15, %c0_16] : memref<4x8x32xbf16, #tpu.memory_space<vmem>>, vector<1x8x32xbf16>
    %42 = vector.shape_cast %41 : vector<1x8x32xbf16> to vector<8x32xbf16>
    %43 = vector.shape_cast %40 : vector<8x32xbf16> to vector<1x8x32xbf16>
    tpu.vector_store %arg18[%c0_14, %c0_15, %c0_16], %43 {strides = array<i32>} : memref<4x8x32xbf16, #tpu.memory_space<vmem>>, vector<1x8x32xbf16>,
    %c1 = arith.constant 1 : index
    %c0_17 = arith.constant 0 : index
    %c0_18 = arith.constant 0 : index
    %44 = vector.load %arg5[%c1, %c0_17, %c0_18] : memref<4x128x32xbf16, #tpu.memory_space<vmem>>, vector<1x128x32xbf16>
    %45 = vector.shape_cast %44 : vector<1x128x32xbf16> to vector<128x32xbf16>
    %cst_19 = arith.constant dense<0.000000e+00> : vector<8x32xf32>
    %46 = tpu.matmul %36, %45, %cst_19 {dimension_numbers = #tpu.dot_dimension_numbers<[1], [0], [0], [1], [0, 0, 1, 1], [], []>} : vector<8x128xbf16>, vector<128x32xbf16>, vector<8x32xf32> -> vector<8x32xf32>
    %47 = arith.truncf %46 : vector<8x32xf32> to vector<8x32xbf16>
    %c1_20 = arith.constant 1 : index
    %c0_21 = arith.constant 0 : index
    %c0_22 = arith.constant 0 : index
    %48 = vector.load %arg18[%c1_20, %c0_21, %c0_22] : memref<4x8x32xbf16, #tpu.memory_space<vmem>>, vector<1x8x32xbf16>
    %49 = vector.shape_cast %48 : vector<1x8x32xbf16> to vector<8x32xbf16>
    %50 = vector.shape_cast %47 : vector<8x32xbf16> to vector<1x8x32xbf16>
    tpu.vector_store %arg18[%c1_20, %c0_21, %c0_22], %50 {strides = array<i32>} : memref<4x8x32xbf16, #tpu.memory_space<vmem>>, vector<1x8x32xbf16>,
    %c2 = arith.constant 2 : index
    %c0_23 = arith.constant 0 : index
    %c0_24 = arith.constant 0 : index
    %51 = vector.load %arg5[%c2, %c0_23, %c0_24] : memref<4x128x32xbf16, #tpu.memory_space<vmem>>, vector<1x128x32xbf16>
    %52 = vector.shape_cast %51 : vector<1x128x32xbf16> to vector<128x32xbf16>
    %cst_25 = arith.constant dense<0.000000e+00> : vector<8x32xf32>
    %53 = tpu.matmul %36, %52, %cst_25 {dimension_numbers = #tpu.dot_dimension_numbers<[1], [0], [0], [1], [0, 0, 1, 1], [], []>} : vector<8x128xbf16>, vector<128x32xbf16>, vector<8x32xf32> -> vector<8x32xf32>
    %54 = arith.truncf %53 : vector<8x32xf32> to vector<8x32xbf16>
    %c2_26 = arith.constant 2 : index
    %c0_27 = arith.constant 0 : index
    %c0_28 = arith.constant 0 : index
    %55 = vector.load %arg18[%c2_26, %c0_27, %c0_28] : memref<4x8x32xbf16, #tpu.memory_space<vmem>>, vector<1x8x32xbf16>
    %56 = vector.shape_cast %55 : vector<1x8x32xbf16> to vector<8x32xbf16>
    %57 = vector.shape_cast %54 : vector<8x32xbf16> to vector<1x8x32xbf16>
    tpu.vector_store %arg18[%c2_26, %c0_27, %c0_28], %57 {strides = array<i32>} : memref<4x8x32xbf16, #tpu.memory_space<vmem>>, vector<1x8x32xbf16>,
    %c3 = arith.constant 3 : index
    %c0_29 = arith.constant 0 : index
    %c0_30 = arith.constant 0 : index
    %58 = vector.load %arg5[%c3, %c0_29, %c0_30] : memref<4x128x32xbf16, #tpu.memory_space<vmem>>, vector<1x128x32xbf16>
    %59 = vector.shape_cast %58 : vector<1x128x32xbf16> to vector<128x32xbf16>
    %cst_31 = arith.constant dense<0.000000e+00> : vector<8x32xf32>
    %60 = tpu.matmul %36, %59, %cst_31 {dimension_numbers = #tpu.dot_dimension_numbers<[1], [0], [0], [1], [0, 0, 1, 1], [], []>} : vector<8x128xbf16>, vector<128x32xbf16>, vector<8x32xf32> -> vector<8x32xf32>
    %61 = arith.truncf %60 : vector<8x32xf32> to vector<8x32xbf16>
    %c3_32 = arith.constant 3 : index
    %c0_33 = arith.constant 0 : index
    %c0_34 = arith.constant 0 : index
    %62 = vector.load %arg18[%c3_32, %c0_33, %c0_34] : memref<4x8x32xbf16, #tpu.memory_space<vmem>>, vector<1x8x32xbf16>
    %63 = vector.shape_cast %62 : vector<1x8x32xbf16> to vector<8x32xbf16>
    %64 = vector.shape_cast %61 : vector<8x32xbf16> to vector<1x8x32xbf16>
    tpu.vector_store %arg18[%c3_32, %c0_33, %c0_34], %64 {strides = array<i32>} : memref<4x8x32xbf16, #tpu.memory_space<vmem>>, vector<1x8x32xbf16>,
    %c0_35 = arith.constant 0 : index
    %c0_36 = arith.constant 0 : index
    %c0_37 = arith.constant 0 : index
    %65 = vector.load %arg18[%c0_35, %c0_36, %c0_37] : memref<4x8x32xbf16, #tpu.memory_space<vmem>>, vector<4x8x32xbf16>
    %cst_38 = arith.constant -1.000000e+30 : f32
    %66 = vector.broadcast %cst_38 : f32 to vector<4x8x1xf32>
    %c0_39 = arith.constant 0 : index
    %c0_40 = arith.constant 0 : index
    %c0_41 = arith.constant 0 : index
    %67 = vector.load %arg19[%c0_39, %c0_40, %c0_41] : memref<4x8x1xf32, #tpu.memory_space<vmem>>, vector<4x8x1xf32>
    tpu.vector_store %arg19[%c0_39, %c0_40, %c0_41], %66 {strides = array<i32>} : memref<4x8x1xf32, #tpu.memory_space<vmem>>, vector<4x8x1xf32>,
    %cst_42 = arith.constant 0.000000e+00 : f32
    %68 = vector.broadcast %cst_42 : f32 to vector<4x8x1xf32>
    %c0_43 = arith.constant 0 : index
    %c0_44 = arith.constant 0 : index
    %c0_45 = arith.constant 0 : index
    %69 = vector.load %arg20[%c0_43, %c0_44, %c0_45] : memref<4x8x1xf32, #tpu.memory_space<vmem>>, vector<4x8x1xf32>
    tpu.vector_store %arg20[%c0_43, %c0_44, %c0_45], %68 {strides = array<i32>} : memref<4x8x1xf32, #tpu.memory_space<vmem>>, vector<4x8x1xf32>,
    %cst_46 = arith.constant 0.000000e+00 : f32
    %70 = vector.broadcast %cst_46 : f32 to vector<4x8x32xf32>
    %c0_47 = arith.constant 0 : index
    %c0_48 = arith.constant 0 : index
    %c0_49 = arith.constant 0 : index
    %71 = vector.load %arg21[%c0_47, %c0_48, %c0_49] : memref<4x8x32xf32, #tpu.memory_space<vmem>>, vector<4x8x32xf32>
    tpu.vector_store %arg21[%c0_47, %c0_48, %c0_49], %70 {strides = array<i32>} : memref<4x8x32xf32, #tpu.memory_space<vmem>>, vector<4x8x32xf32>,
    %72 = tpu.iota {dimensions = array<i32: 1>} : vector<4x8x8xi32>
    %73 = vector.broadcast %8 : i32 to vector<4x8x8xi32>
    %74 = arith.addi %72, %73 : vector<4x8x8xi32>
    %75 = tpu.iota {dimensions = array<i32: 2>} : vector<4x8x8xi32>
    %c0_50 = arith.constant 0 : index
    %c0_51 = arith.constant 0 : index
    %c0_52 = arith.constant 0 : index
    %76 = vector.load %arg16[%c0_50, %c0_51, %c0_52] : memref<4x8x32xbf16, #tpu.memory_space<vmem>>, vector<4x8x32xbf16>
    %c0_53 = arith.constant 0 : index
    %c0_54 = arith.constant 0 : index
    %c0_55 = arith.constant 0 : index
    %77 = vector.load %arg17[%c0_53, %c0_54, %c0_55] : memref<4x8x32xbf16, #tpu.memory_space<vmem>>, vector<4x8x32xbf16>
    "tpu.trace_start"() <{level = 10 : i32, message = "hqd,hkd->hqk"}> : () -> ()
    %cst_56 = arith.constant dense<0.000000e+00> : vector<4x8x8xf32>
    %78 = tpu.matmul %65, %76, %cst_56 {dimension_numbers = #tpu.dot_dimension_numbers<[2], [2], [1], [1], [0, 0, 0, 1, 1, 1], [0], [0]>} : vector<4x8x32xbf16>, vector<4x8x32xbf16>, vector<4x8x8xf32> -> vector<4x8x8xf32>
    "tpu.trace_stop"() : () -> ()
    %c0_i32_57 = arith.constant 0 : i32
    %79 = vector.broadcast %c0_i32_57 : i32 to vector<4x8x8xi32>
    %80 = arith.addi %75, %79 : vector<4x8x8xi32>
    %81 = arith.cmpi sgt, %80, %74 : vector<4x8x8xi32>
    %cst_58 = arith.constant -1.000000e+30 : f32
    %82 = vector.broadcast %cst_58 : f32 to vector<4x8x8xf32>
    %83 = arith.select %81, %82, %78 : vector<4x8x8xi1>, vector<4x8x8xf32>
    %c0_59 = arith.constant 0 : index
    %c0_60 = arith.constant 0 : index
    %c0_61 = arith.constant 0 : index
    %84 = vector.load %arg19[%c0_59, %c0_60, %c0_61] : memref<4x8x1xf32, #tpu.memory_space<vmem>>, vector<4x8x1xf32>
    %cst_62 = arith.constant dense<0xFF800000> : vector<4x8xf32>
    %85 = vector.multi_reduction <maximumf>, %83, %cst_62 [2] : vector<4x8x8xf32> to vector<4x8xf32>
    %86 = vector.shape_cast %85 : vector<4x8xf32> to vector<4x8x1xf32>
    %87 = arith.maximumf %84, %86 : vector<4x8x1xf32>
    %88 = arith.subf %84, %87 : vector<4x8x1xf32>
    %89 = math.exp %88 : vector<4x8x1xf32>
    %90 = vector.broadcast %87 : vector<4x8x1xf32> to vector<4x8x8xf32>
    %91 = arith.subf %83, %90 : vector<4x8x8xf32>
    %92 = math.exp %91 : vector<4x8x8xf32>
    %c0_63 = arith.constant 0 : index
    %c0_64 = arith.constant 0 : index
    %c0_65 = arith.constant 0 : index
    %93 = vector.load %arg20[%c0_63, %c0_64, %c0_65] : memref<4x8x1xf32, #tpu.memory_space<vmem>>, vector<4x8x1xf32>
    %94 = arith.mulf %89, %93 : vector<4x8x1xf32>
    %cst_66 = arith.constant dense<0.000000e+00> : vector<4x8xf32>
    %95 = vector.multi_reduction <add>, %92, %cst_66 [2] : vector<4x8x8xf32> to vector<4x8xf32>
    %96 = vector.shape_cast %95 : vector<4x8xf32> to vector<4x8x1xf32>
    %97 = arith.addf %94, %96 : vector<4x8x1xf32>
    %c0_67 = arith.constant 0 : index
    %c0_68 = arith.constant 0 : index
    %c0_69 = arith.constant 0 : index
    %98 = vector.load %arg20[%c0_67, %c0_68, %c0_69] : memref<4x8x1xf32, #tpu.memory_space<vmem>>, vector<4x8x1xf32>
    tpu.vector_store %arg20[%c0_67, %c0_68, %c0_69], %97 {strides = array<i32>} : memref<4x8x1xf32, #tpu.memory_space<vmem>>, vector<4x8x1xf32>,
    %c0_70 = arith.constant 0 : index
    %c0_71 = arith.constant 0 : index
    %c0_72 = arith.constant 0 : index
    %99 = vector.load %arg21[%c0_70, %c0_71, %c0_72] : memref<4x8x32xf32, #tpu.memory_space<vmem>>, vector<4x8x32xf32>
    %100 = vector.broadcast %89 : vector<4x8x1xf32> to vector<4x8x32xf32>
    %101 = arith.mulf %100, %99 : vector<4x8x32xf32>
    %102 = arith.truncf %92 : vector<4x8x8xf32> to vector<4x8x8xbf16>
    "tpu.trace_start"() <{level = 10 : i32, message = "hqk,hkd->hqd"}> : () -> ()
    %cst_73 = arith.constant dense<0.000000e+00> : vector<4x8x32xf32>
    %103 = tpu.matmul %102, %77, %cst_73 {dimension_numbers = #tpu.dot_dimension_numbers<[2], [1], [1], [2], [0, 0, 0, 1, 1, 2], [0], [0]>} : vector<4x8x8xbf16>, vector<4x8x32xbf16>, vector<4x8x32xf32> -> vector<4x8x32xf32>
    "tpu.trace_stop"() : () -> ()
    %104 = arith.addf %101, %103 : vector<4x8x32xf32>
    %c0_74 = arith.constant 0 : index
    %c0_75 = arith.constant 0 : index
    %c0_76 = arith.constant 0 : index
    %105 = vector.load %arg21[%c0_74, %c0_75, %c0_76] : memref<4x8x32xf32, #tpu.memory_space<vmem>>, vector<4x8x32xf32>
    tpu.vector_store %arg21[%c0_74, %c0_75, %c0_76], %104 {strides = array<i32>} : memref<4x8x32xf32, #tpu.memory_space<vmem>>, vector<4x8x32xf32>,
    %c0_77 = arith.constant 0 : index
    %c0_78 = arith.constant 0 : index
    %c0_79 = arith.constant 0 : index
    %106 = vector.load %arg19[%c0_77, %c0_78, %c0_79] : memref<4x8x1xf32, #tpu.memory_space<vmem>>, vector<4x8x1xf32>
    tpu.vector_store %arg19[%c0_77, %c0_78, %c0_79], %87 {strides = array<i32>} : memref<4x8x1xf32, #tpu.memory_space<vmem>>, vector<4x8x1xf32>,
    %c0_80 = arith.constant 0 : index
    %c0_81 = arith.constant 0 : index
    %c0_82 = arith.constant 0 : index
    %107 = vector.load %arg21[%c0_80, %c0_81, %c0_82] : memref<4x8x32xf32, #tpu.memory_space<vmem>>, vector<4x8x32xf32>
    %c0_83 = arith.constant 0 : index
    %c0_84 = arith.constant 0 : index
    %c0_85 = arith.constant 0 : index
    %108 = vector.load %arg20[%c0_83, %c0_84, %c0_85] : memref<4x8x1xf32, #tpu.memory_space<vmem>>, vector<4x8x1xf32>
    %109 = tpu.reciprocal %108 {approx = true} : vector<4x8x1xf32> -> vector<4x8x1xf32>
    %110 = vector.broadcast %109 : vector<4x8x1xf32> to vector<4x8x32xf32>
    %111 = arith.mulf %107, %110 : vector<4x8x32xf32>
    %cst_86 = arith.constant 0.000000e+00 : f32
    %112 = vector.broadcast %cst_86 : f32 to vector<8x128xf32>
    %113 = vector.extract_strided_slice %111 {offsets = [0, 0, 0], sizes = [1, 8, 32], strides = [1, 1, 1]} : vector<4x8x32xf32> to vector<1x8x32xf32>
    %114 = vector.shape_cast %113 : vector<1x8x32xf32> to vector<8x32xf32>
    %115 = arith.truncf %114 : vector<8x32xf32> to vector<8x32xbf16>
    %c0_87 = arith.constant 0 : index
    %c0_88 = arith.constant 0 : index
    %c0_89 = arith.constant 0 : index
    %116 = vector.load %arg8[%c0_87, %c0_88, %c0_89] : memref<4x32x128xbf16, #tpu.memory_space<vmem>>, vector<1x32x128xbf16>
    %117 = vector.shape_cast %116 : vector<1x32x128xbf16> to vector<32x128xbf16>
    %cst_90 = arith.constant dense<0.000000e+00> : vector<8x128xf32>
    %118 = tpu.matmul %115, %117, %cst_90 {dimension_numbers = #tpu.dot_dimension_numbers<[1], [0], [0], [1], [0, 0, 1, 1], [], []>} : vector<8x32xbf16>, vector<32x128xbf16>, vector<8x128xf32> -> vector<8x128xf32>
    %119 = arith.addf %112, %118 : vector<8x128xf32>
    %120 = vector.extract_strided_slice %111 {offsets = [1, 0, 0], sizes = [1, 8, 32], strides = [1, 1, 1]} : vector<4x8x32xf32> to vector<1x8x32xf32>
    %121 = vector.shape_cast %120 : vector<1x8x32xf32> to vector<8x32xf32>
    %122 = arith.truncf %121 : vector<8x32xf32> to vector<8x32xbf16>
    %c1_91 = arith.constant 1 : index
    %c0_92 = arith.constant 0 : index
    %c0_93 = arith.constant 0 : index
    %123 = vector.load %arg8[%c1_91, %c0_92, %c0_93] : memref<4x32x128xbf16, #tpu.memory_space<vmem>>, vector<1x32x128xbf16>
    %124 = vector.shape_cast %123 : vector<1x32x128xbf16> to vector<32x128xbf16>
    %cst_94 = arith.constant dense<0.000000e+00> : vector<8x128xf32>
    %125 = tpu.matmul %122, %124, %cst_94 {dimension_numbers = #tpu.dot_dimension_numbers<[1], [0], [0], [1], [0, 0, 1, 1], [], []>} : vector<8x32xbf16>, vector<32x128xbf16>, vector<8x128xf32> -> vector<8x128xf32>
    %126 = arith.addf %119, %125 : vector<8x128xf32>
    %127 = vector.extract_strided_slice %111 {offsets = [2, 0, 0], sizes = [1, 8, 32], strides = [1, 1, 1]} : vector<4x8x32xf32> to vector<1x8x32xf32>
    %128 = vector.shape_cast %127 : vector<1x8x32xf32> to vector<8x32xf32>
    %129 = arith.truncf %128 : vector<8x32xf32> to vector<8x32xbf16>
    %c2_95 = arith.constant 2 : index
    %c0_96 = arith.constant 0 : index
    %c0_97 = arith.constant 0 : index
    %130 = vector.load %arg8[%c2_95, %c0_96, %c0_97] : memref<4x32x128xbf16, #tpu.memory_space<vmem>>, vector<1x32x128xbf16>
    %131 = vector.shape_cast %130 : vector<1x32x128xbf16> to vector<32x128xbf16>
    %cst_98 = arith.constant dense<0.000000e+00> : vector<8x128xf32>
    %132 = tpu.matmul %129, %131, %cst_98 {dimension_numbers = #tpu.dot_dimension_numbers<[1], [0], [0], [1], [0, 0, 1, 1], [], []>} : vector<8x32xbf16>, vector<32x128xbf16>, vector<8x128xf32> -> vector<8x128xf32>
    %133 = arith.addf %126, %132 : vector<8x128xf32>
    %134 = vector.extract_strided_slice %111 {offsets = [3, 0, 0], sizes = [1, 8, 32], strides = [1, 1, 1]} : vector<4x8x32xf32> to vector<1x8x32xf32>
    %135 = vector.shape_cast %134 : vector<1x8x32xf32> to vector<8x32xf32>
    %136 = arith.truncf %135 : vector<8x32xf32> to vector<8x32xbf16>
    %c3_99 = arith.constant 3 : index
    %c0_100 = arith.constant 0 : index
    %c0_101 = arith.constant 0 : index
    %137 = vector.load %arg8[%c3_99, %c0_100, %c0_101] : memref<4x32x128xbf16, #tpu.memory_space<vmem>>, vector<1x32x128xbf16>
    %138 = vector.shape_cast %137 : vector<1x32x128xbf16> to vector<32x128xbf16>
    %cst_102 = arith.constant dense<0.000000e+00> : vector<8x128xf32>
    %139 = tpu.matmul %136, %138, %cst_102 {dimension_numbers = #tpu.dot_dimension_numbers<[1], [0], [0], [1], [0, 0, 1, 1], [], []>} : vector<8x32xbf16>, vector<32x128xbf16>, vector<8x128xf32> -> vector<8x128xf32>
    %140 = arith.addf %133, %139 : vector<8x128xf32>
    %141 = arith.addf %11, %140 : vector<8x128xf32>
    %c0_103 = arith.constant 0 : index
    %c0_104 = arith.constant 0 : index
    %142 = vector.load %arg9[%c0_103, %c0_104] : memref<1x128xf32, #tpu.memory_space<vmem>>, vector<1x128xf32>
    %143 = vector.shape_cast %142 : vector<1x128xf32> to vector<128xf32>
    %c0_105 = arith.constant 0 : index
    %c0_106 = arith.constant 0 : index
    %144 = vector.load %arg10[%c0_105, %c0_106] : memref<1x128xf32, #tpu.memory_space<vmem>>, vector<1x128xf32>
    %145 = vector.shape_cast %144 : vector<1x128xf32> to vector<128xf32>
    %cst_107 = arith.constant dense<0.000000e+00> : vector<8xf32>
    %146 = vector.multi_reduction <add>, %141, %cst_107 [1] : vector<8x128xf32> to vector<8xf32>
    %147 = vector.shape_cast %146 : vector<8xf32> to vector<8x1xf32>
    %cst_108 = arith.constant 1.280000e+02 : f32
    %148 = vector.broadcast %cst_108 : f32 to vector<8x1xf32>
    %149 = arith.divf %147, %148 : vector<8x1xf32>
    %150 = vector.broadcast %149 : vector<8x1xf32> to vector<8x128xf32>
    %151 = arith.subf %141, %150 : vector<8x128xf32>
    %152 = arith.mulf %151, %151 : vector<8x128xf32>
    %cst_109 = arith.constant dense<0.000000e+00> : vector<8xf32>
    %153 = vector.multi_reduction <add>, %152, %cst_109 [1] : vector<8x128xf32> to vector<8xf32>
    %154 = vector.shape_cast %153 : vector<8xf32> to vector<8x1xf32>
    %cst_110 = arith.constant 1.280000e+02 : f32
    %155 = vector.broadcast %cst_110 : f32 to vector<8x1xf32>
    %156 = arith.divf %154, %155 : vector<8x1xf32>
    %cst_111 = arith.constant 9.99999974E-6 : f32
    %157 = vector.broadcast %cst_111 : f32 to vector<8x1xf32>
    %158 = arith.addf %156, %157 : vector<8x1xf32>
    %159 = math.rsqrt %158 : vector<8x1xf32>
    %160 = vector.broadcast %149 : vector<8x1xf32> to vector<8x128xf32>
    %161 = arith.subf %141, %160 : vector<8x128xf32>
    %162 = vector.broadcast %159 : vector<8x1xf32> to vector<8x128xf32>
    %163 = arith.mulf %161, %162 : vector<8x128xf32>
    %164 = vector.shape_cast %143 : vector<128xf32> to vector<1x128xf32>
    %165 = vector.broadcast %164 : vector<1x128xf32> to vector<8x128xf32>
    %166 = arith.mulf %163, %165 : vector<8x128xf32>
    %167 = vector.shape_cast %145 : vector<128xf32> to vector<1x128xf32>
    %168 = vector.broadcast %167 : vector<1x128xf32> to vector<8x128xf32>
    %169 = arith.addf %166, %168 : vector<8x128xf32>
    %170 = arith.truncf %169 : vector<8x128xf32> to vector<8x128xbf16>
    %cst_112 = arith.constant 0.000000e+00 : f32
    %171 = vector.broadcast %cst_112 : f32 to vector<8x128xf32>
    %c0_113 = arith.constant 0 : index
    %c0_114 = arith.constant 0 : index
    %172 = vector.load %arg11[%c0_113, %c0_114] : memref<128x256xbf16, #tpu.memory_space<vmem>>, vector<128x256xbf16>
    %cst_115 = arith.constant dense<0.000000e+00> : vector<8x256xf32>
    %173 = tpu.matmul %170, %172, %cst_115 {dimension_numbers = #tpu.dot_dimension_numbers<[1], [0], [0], [1], [0, 0, 1, 1], [], []>} : vector<8x128xbf16>, vector<128x256xbf16>, vector<8x256xf32> -> vector<8x256xf32>
    %c0_116 = arith.constant 0 : index
    %c0_117 = arith.constant 0 : index
    %174 = vector.load %arg12[%c0_116, %c0_117] : memref<1x256xf32, #tpu.memory_space<vmem>>, vector<1x256xf32>
    %175 = vector.shape_cast %174 : vector<1x256xf32> to vector<256xf32>
    %176 = vector.shape_cast %175 : vector<256xf32> to vector<1x256xf32>
    %177 = vector.broadcast %176 : vector<1x256xf32> to vector<8x256xf32>
    %178 = arith.addf %173, %177 : vector<8x256xf32>
    %cst_118 = arith.constant 5.000000e-01 : f32
    %179 = vector.broadcast %cst_118 : f32 to vector<8x256xf32>
    %180 = arith.mulf %179, %178 : vector<8x256xf32>
    %181 = arith.mulf %178, %178 : vector<8x256xf32>
    %182 = arith.mulf %181, %178 : vector<8x256xf32>
    %cst_119 = arith.constant 4.471500e-02 : f32
    %183 = vector.broadcast %cst_119 : f32 to vector<8x256xf32>
    %184 = arith.mulf %183, %182 : vector<8x256xf32>
    %185 = arith.addf %178, %184 : vector<8x256xf32>
    %cst_120 = arith.constant 0.797884583 : f32
    %186 = vector.broadcast %cst_120 : f32 to vector<8x256xf32>
    %187 = arith.mulf %186, %185 : vector<8x256xf32>
    %188 = math.tanh %187 : vector<8x256xf32>
    %cst_121 = arith.constant 1.000000e+00 : f32
    %189 = vector.broadcast %cst_121 : f32 to vector<8x256xf32>
    %190 = arith.addf %189, %188 : vector<8x256xf32>
    %191 = arith.mulf %180, %190 : vector<8x256xf32>
    %192 = arith.truncf %191 : vector<8x256xf32> to vector<8x256xbf16>
    %c0_122 = arith.constant 0 : index
    %c0_123 = arith.constant 0 : index
    %193 = vector.load %arg13[%c0_122, %c0_123] : memref<256x128xbf16, #tpu.memory_space<vmem>>, vector<256x128xbf16>
    %cst_124 = arith.constant dense<0.000000e+00> : vector<8x128xf32>
    %194 = tpu.matmul %192, %193, %cst_124 {dimension_numbers = #tpu.dot_dimension_numbers<[1], [0], [0], [1], [0, 0, 1, 1], [], []>} : vector<8x256xbf16>, vector<256x128xbf16>, vector<8x128xf32> -> vector<8x128xf32>
    %195 = arith.addf %171, %194 : vector<8x128xf32>
    %196 = arith.addf %141, %195 : vector<8x128xf32>
    %c0_125 = arith.constant 0 : index
    %c0_126 = arith.constant 0 : index
    %197 = vector.load %arg14[%c0_125, %c0_126] : memref<1x128xf32, #tpu.memory_space<vmem>>, vector<1x128xf32>
    %198 = vector.shape_cast %197 : vector<1x128xf32> to vector<128xf32>
    %199 = vector.shape_cast %198 : vector<128xf32> to vector<1x128xf32>
    %200 = vector.broadcast %199 : vector<1x128xf32> to vector<8x128xf32>
    %201 = arith.addf %196, %200 : vector<8x128xf32>
    %c0_127 = arith.constant 0 : index
    %c0_128 = arith.constant 0 : index
    %c0_129 = arith.constant 0 : index
    %202 = vector.load %arg15[%c0_127, %c0_128, %c0_129] : memref<1x8x128xf32, #tpu.memory_space<vmem>>, vector<1x8x128xf32>
    %203 = vector.shape_cast %202 : vector<1x8x128xf32> to vector<8x128xf32>
    %204 = vector.shape_cast %201 : vector<8x128xf32> to vector<1x8x128xf32>
    tpu.vector_store %arg15[%c0_127, %c0_128, %c0_129], %204 {strides = array<i32>} : memref<1x8x128xf32, #tpu.memory_space<vmem>>, vector<1x8x128xf32>,
    return
  }
  func.func @transform_0(%arg0: i32, %arg1: i32) -> (i32, i32, i32) {
    %c0_i32 = arith.constant 0 : i32
    %c0_i32_0 = arith.constant 0 : i32
    %c0_i32_1 = arith.constant 0 : i32
    return %arg0, %c0_i32, %c0_i32_0 : i32, i32, i32
  }
  func.func @transform_1(%arg0: i32, %arg1: i32) -> (i32, i32) {
    %c0_i32 = arith.constant 0 : i32
    %c0_i32_0 = arith.constant 0 : i32
    %c0_i32_1 = arith.constant 0 : i32
    return %c0_i32, %c0_i32_0 : i32, i32
  }
  func.func @transform_2(%arg0: i32, %arg1: i32) -> (i32, i32) {
    %c0_i32 = arith.constant 0 : i32
    %c0_i32_0 = arith.constant 0 : i32
    %c0_i32_1 = arith.constant 0 : i32
    return %c0_i32, %c0_i32_0 : i32, i32
  }
  func.func @transform_3(%arg0: i32, %arg1: i32) -> (i32, i32, i32) {
    %c0_i32 = arith.constant 0 : i32
    %c0_i32_0 = arith.constant 0 : i32
    %c0_i32_1 = arith.constant 0 : i32
    %c0_i32_2 = arith.constant 0 : i32
    return %c0_i32, %c0_i32_0, %c0_i32_1 : i32, i32, i32
  }
  func.func @transform_4(%arg0: i32, %arg1: i32) -> (i32, i32, i32) {
    %c0_i32 = arith.constant 0 : i32
    %c0_i32_0 = arith.constant 0 : i32
    %c0_i32_1 = arith.constant 0 : i32
    %c0_i32_2 = arith.constant 0 : i32
    return %c0_i32, %c0_i32_0, %c0_i32_1 : i32, i32, i32
  }
  func.func @transform_5(%arg0: i32, %arg1: i32) -> (i32, i32, i32) {
    %c0_i32 = arith.constant 0 : i32
    %c0_i32_0 = arith.constant 0 : i32
    %c0_i32_1 = arith.constant 0 : i32
    %c0_i32_2 = arith.constant 0 : i32
    return %c0_i32, %c0_i32_0, %c0_i32_1 : i32, i32, i32
  }
  func.func @transform_6(%arg0: i32, %arg1: i32) -> (i32, i32, i32) {
    %c0_i32 = arith.constant 0 : i32
    %c0_i32_0 = arith.constant 0 : i32
    %c0_i32_1 = arith.constant 0 : i32
    %c0_i32_2 = arith.constant 0 : i32
    return %c0_i32, %c0_i32_0, %c0_i32_1 : i32, i32, i32
  }
  func.func @transform_7(%arg0: i32, %arg1: i32) -> (i32, i32) {
    %c0_i32 = arith.constant 0 : i32
    %c0_i32_0 = arith.constant 0 : i32
    %c0_i32_1 = arith.constant 0 : i32
    return %c0_i32, %c0_i32_0 : i32, i32
  }
  func.func @transform_8(%arg0: i32, %arg1: i32) -> (i32, i32) {
    %c0_i32 = arith.constant 0 : i32
    %c0_i32_0 = arith.constant 0 : i32
    %c0_i32_1 = arith.constant 0 : i32
    return %c0_i32, %c0_i32_0 : i32, i32
  }
  func.func @transform_9(%arg0: i32, %arg1: i32) -> (i32, i32) {
    %c0_i32 = arith.constant 0 : i32
    %c0_i32_0 = arith.constant 0 : i32
    %c0_i32_1 = arith.constant 0 : i32
    return %c0_i32, %c0_i32_0 : i32, i32
  }
  func.func @transform_10(%arg0: i32, %arg1: i32) -> (i32, i32) {
    %c0_i32 = arith.constant 0 : i32
    %c0_i32_0 = arith.constant 0 : i32
    %c0_i32_1 = arith.constant 0 : i32
    return %c0_i32, %c0_i32_0 : i32, i32
  }
  func.func @transform_11(%arg0: i32, %arg1: i32) -> (i32, i32) {
    %c0_i32 = arith.constant 0 : i32
    %c0_i32_0 = arith.constant 0 : i32
    %c0_i32_1 = arith.constant 0 : i32
    return %c0_i32, %c0_i32_0 : i32, i32
  }
  func.func @transform_12(%arg0: i32, %arg1: i32) -> (i32, i32) {
    %c0_i32 = arith.constant 0 : i32
    %c0_i32_0 = arith.constant 0 : i32
    %c0_i32_1 = arith.constant 0 : i32
    return %c0_i32, %c0_i32_0 : i32, i32
  }
  func.func @transform_13(%arg0: i32, %arg1: i32) -> (i32, i32, i32) {
    %c0_i32 = arith.constant 0 : i32
    %c0_i32_0 = arith.constant 0 : i32
    return %arg0, %arg1, %c0_i32 : i32, i32, i32
  }
}

</mosaic_0001>

<bundles_post_ra>
// kernel: tpu_custom_call.1
= control target key start
LH: loop header
LB: loop body
LE: loop exit
PB: predicated region body
PF: predicated region fallthrough
CT: control target
= control target key end

     0   :  { %s5112_s0 = inlined_call_operand.vmem [shape: f32[2,8,128], index: 0, kind: input, shape index: {}]   ;;  %s5113_s1 = inlined_call_operand.vmem [shape: f32[1,128], index: 1, kind: input, shape index: {}]   ;;  %s5114_s2 = inlined_call_operand.vmem [shape: f32[1,128], index: 2, kind: input, shape index: {}]   ;;  %s5115_s3 = inlined_call_operand.vmem [shape: bf16[4,128,32], index: 3, kind: input, shape index: {}]   ;;  %s5116_s4 = inlined_call_operand.vmem [shape: bf16[4,128,32], index: 4, kind: input, shape index: {}]   ;;  %s5117_s5 = inlined_call_operand.vmem [shape: bf16[4,128,32], index: 5, kind: input, shape index: {}]   ;;  %s5118_s6 = inlined_call_operand.vmem [shape: bf16[4,32,128], index: 6, kind: input, shape index: {}]   ;;  %s5119_s7 = inlined_call_operand.vmem [shape: f32[1,128], index: 7, kind: input, shape index: {}]   ;;  %s5120_s8 = inlined_call_operand.vmem [shape: f32[1,128], index: 8, kind: input, shape index: {}]   ;;  %s5121_s9 = inlined_call_operand.vmem [shape: bf16[128,256], index: 9, kind: input, shape index: {}]   ;;  %s5122_s10 = inlined_call_operand.vmem [shape: f32[1,256], index: 10, kind: input, shape index: {}]   ;;  %s5123_s11 = inlined_call_operand.vmem [shape: bf16[256,128], index: 11, kind: input, shape index: {}]   ;;  %s5124_s12 = inlined_call_operand.vmem [shape: f32[1,128], index: 12, kind: input, shape index: {}]   ;;  %s5125_s13 = inlined_call_operand.hbm [shape: f32[2,8,128], index: 13, kind: output, shape index: {}]  }
   0x1   :  { %5129 = sst [smem:[#allocation15_spill]] %s5112_s0 }
   0x2   :  { %18 = vsyncpa [#allocation9], 0 }
   0x3   :  { %20 = vsyncpa [#allocation9 + $0x1], 0  ;;  %s4283_s25 = smov 0   ;;  %s4285_s26 = smov 0  }
   0x4   :  { %s4287_s27 = smov 0   ;;  %s4289_s28 = smov 0  }
   0x5   :  { %s4291_s29 = smov 0   ;;  %s4293_s30 = smov 0  }
   0x6 LB: > { %5130 = sst [smem:[#allocation11_spill]] %s4194_s27  ;;  %s3092_s14 = sadd.s32 4294967295, %s4206_s30   ;;  %s4206_s30 = sphi %s4293_s30, %s26_s30   ;;  %s4202_s29 = sphi %s4291_s29, %s5140_s29   ;;  %s4198_s28 = sphi %s4289_s28, %s5143_s28   ;;  %s4194_s27 = sphi %s4287_s27, %s5138_s27   ;;  %s4190_s26 = sphi %s4285_s26, %s5142_s26   ;;  %s4186_s25 = sphi %s4283_s25, %s5141_s25  }
   0x7   : > { %5131 = sst [smem:[#allocation12_spill]] %s4202_s29  ;;  %s3093_s15 = sadd.s32 4294967294, %s4206_s30  }
   0x8   : > { %s38_s16 = sadd.s32 1, %s4202_s29  ;;  %s325_s17 = sadd.s32 1, %s4194_s27 }
   0x9   : > { %p40_p0 = scmp.ge.s32.totalorder %s38_s16, 2  ;;  %p335_p1 = scmp.ne.s32.totalorder %s4194_s27, %s4190_s26 }
   0xa   : > { %p336_p2 = scmp.eq.s32.totalorder %s3092_s14, 1  ;;  %p341_p3 = scmp.ne.s32.totalorder %s4190_s26, %s4186_s25 }
   0xb   : > { %s5145_s16 = smov (%p40_p0, %s38_s16), 0  ;;  %p342_p5 = scmp.eq.s32.totalorder %s3093_s15, 1 }
   0xc   : > { %5132 = sst [smem:[#allocation13_spill]] %s5145_s16  ;;  %p4323_p4 = por %p336_p2, %p335_p1 }
   0xd   : > { %s320_s19 = ssub.s32 %s4202_s29, %s5145_s16  ;;  %p3096_p6 = scmp.ge.s32.totalorder %s4206_s30, 1 }
   0xe   : > { %p323_p7 = scmp.eq.s32.totalorder %s320_s19, 0  ;;  %p4330_p8 = por %p342_p5, %p341_p3 }
   0xf   : > { %p403_p9 = scmp.lt.s32.totalorder %s4206_s30, 3 }
  0x10   : > { %s4336_s21 = scalar_select %p323_p7, %s4194_s27, %s325_s17  }
  0x11   : > { %p404_p10 = pnand %p3096_p6, %p403_p9 }
  0x12   : > { %5135 = sst [smem:[#allocation14_spill]] %s4336_s21  ;;  %p446_p11 = scmp.lt.s32.totalorder (!%p404_p10), %s4198_s28, 1 }
  0x13   : > { %407 = sbr.rel (%p404_p10) target bundleno = 2420 (0x974), region = 72  ;;  %s5136_s0 = sld [smem:[#allocation15_spill]] (!%p404_p10) }
  0x14   : > { %s3407_s29 = sshll.u32 (!%p404_p10), %s4198_s28, 7 }
  0x15   : > { %s3020_s19 = scalar_lea.hbm (!%p404_p10), %s5125_s13, %s3407_s29 }
  0x18   : > { %s447_s22 = scalar_select %p446_p11, %s4198_s28, 1  ;;  %v3951_v1 = vld [vmem:[%s5116_s4 + $0x38] sm:$0xff]   ;;  %v3953_v3 = vld [vmem:[%s5116_s4 + $0x30] sm:$0xff]   ;;  %v4208_v4 = vmov 0.0   ;;  %v3955_v14 = vld [vmem:[%s5116_s4 + $0x28] sm:$0xff]   ;;  %vm4209_vm0 = vmmov 0  }
  0x19   : > { %v3952_v2 = vld [vmem:[%s5117_s5 + $0x38] sm:$0xff]   ;;  %3570 = vmatprep.subr.bf16.mxu0 %v4208_v4  ;;  %3590 = vmatprep.subr.bf16.mxu1 %v4208_v4  ;;  %v3954_v5 = vld [vmem:[%s5117_s5 + $0x30] sm:$0xff]   ;;  %v3956_v15 = vld [vmem:[%s5117_s5 + $0x28] sm:$0xff]   ;;  %vm1820_vm1 = vcmask 261120   ;;  %vm590_vm2 = vcmask 257024   ;;  %vm2156_vm3 = vcmask 1043456  }
  0x1a   : > { %s3098_s23 = sshll.u32 %s447_s22, 3  ;;  %3571 = vmatpush3.bf16.msra.mxu0 %v3951_v1  ;;  %3591 = vmatpush3.bf16.msra.mxu1 %v3952_v2  ;;  %v3957_v16 = vld [vmem:[%s5116_s4 + $0x20] sm:$0xff]   ;;  %v3959_v18 = vld [vmem:[%s5116_s4 + $0x18] sm:$0xff]   ;;  %v3961_v20 = vld [vmem:[%s5116_s4 + $0x10] sm:$0xff]   ;;  %1821 = vst.msk [vmem:[#allocation7] sm:$0xff] %vm1820_vm1, %v4208_v4  ;;  %vm1811_vm4 = vcmask 7168  }
  0x1b   : > { %s4343_s15 = scalar_lea.vmem %s5136_s0, %s3098_s23  ;;  %3572 = vmatprep.subr.bf16.mxu0 %v4208_v4  ;;  %3592 = vmatprep.subr.bf16.mxu1 %v4208_v4  ;;  %v3958_v17 = vld [vmem:[%s5117_s5 + $0x20] sm:$0xff]   ;;  %v3960_v19 = vld [vmem:[%s5117_s5 + $0x18] sm:$0xff]   ;;  %v3962_v21 = vld [vmem:[%s5117_s5 + $0x10] sm:$0xff]   ;;  %1822 = vst.msk [vmem:[#allocation7 + $0x8] sm:$0xff] %vm1820_vm1, %v4208_v4  ;;  %vm2032_vm6 = vcmask 64512   ;;  %s443_s22 = sand.u32 1, %s4190_s26  }
  0x1c   : > { %v1348_v0 = vld [vmem:[%s4343_s15] sm:$0xff]  ;;  %v3963_v22 = vld [vmem:[%s5116_s4 + $0x8] sm:$0xff]   ;;  %3586 = vmatprep.mubr.msk.bf16.mxu0 %vm4209_vm0, %v4208_v4  ;;  %3606 = vmatprep.mubr.msk.bf16.mxu1 %vm4209_vm0, %v4208_v4  ;;  %v3967_v42 = vld [vmem:[%s5116_s4 + $0x78] sm:$0xff]   ;;  %1823 = vst.msk [vmem:[#allocation7 + $0x10] sm:$0xff] %vm1820_vm1, %v4208_v4  ;;  %s3097_s23 = sshll.u32 %s443_s22, 3  ;;  %s3008_s17 = scalar_lea.sflag [#allocation9], %s443_s22 }
  0x1d   : > { %1349 = vadd.xlane.f32.xlu1 %v1348_v0  ;;  %458 = vadd.xlane.f32.xlu0 %v1348_v0  ;;  %v3964_v23 = vld [vmem:[%s5117_s5 + $0x8] sm:$0xff]   ;;  %v3965_v24 = vld [vmem:[%s5116_s4] sm:$0xff]   ;;  %v3968_v43 = vld [vmem:[%s5117_s5 + $0x78] sm:$0xff]   ;;  %1824 = vst.msk [vmem:[#allocation7 + $0x18] sm:$0xff] %vm1820_vm1, %v4208_v4  ;;  %s445_s16 = scalar_lea.vmem [#allocation8], %s3097_s23 }
  0x1e   : > { %3573 = vmatpush3.bf16.msra.mxu0 %v3953_v3  ;;  %3593 = vmatpush3.bf16.msra.mxu1 %v3954_v5  ;;  %v3966_v25 = vld [vmem:[%s5117_s5] sm:$0xff]   ;;  %v3969_v45 = vld [vmem:[%s5116_s4 + $0x70] sm:$0xff]   ;;  %v3971_v47 = vld [vmem:[%s5116_s4 + $0x68] sm:$0xff]   ;;  %1816 = vst.msk [vmem:[#allocation6] sm:$0xff] %vm1811_vm4, %v4208_v4  ;;  %s3022_s21 = sshll.u32 %s445_s16, 4  ;;  %s3023_s21 = int_to_ptr.vmem [resolvable:$true] %s3022_s21 }
  0x1f   : > { %3574 = vmatprep.subr.bf16.mxu0 %v4208_v4  ;;  %3594 = vmatprep.subr.bf16.mxu1 %v4208_v4  ;;  %v3410_v33 = vld [vmem:[%s5113_s1] ss:$0 sm:$0xff]  ;;  %v3970_v46 = vld [vmem:[%s5117_s5 + $0x70] sm:$0xff]   ;;  %v3972_v48 = vld [vmem:[%s5117_s5 + $0x68] sm:$0xff]   ;;  %1817 = vst.msk [vmem:[#allocation6 + $0x8] sm:$0xff] %vm1811_vm4, %v4208_v4  ;;  %s4130_s0 = scalar_lea.vmem %s3023_s21, 128 }
  0x20   : > { %v3411_v36 = vld [vmem:[%s5114_s2] ss:$0 sm:$0xff]  ;;  %v3975_v51 = vld [vmem:[%s5116_s4 + $0x58] sm:$0xff]   ;;  %v3977_v53 = vld [vmem:[%s5116_s4 + $0x50] sm:$0xff]   ;;  %1818 = vst.msk [vmem:[#allocation6 + $0x10] sm:$0xff] %vm1811_vm4, %v4208_v4  ;;  %p4131_p12 = scmp.ne.s32.totalorder %s3023_s21, %s4130_s0 }
  0x21   : > { %v3973_v49 = vld [vmem:[%s5116_s4 + $0x60] sm:$0xff]   ;;  %v3976_v52 = vld [vmem:[%s5117_s5 + $0x58] sm:$0xff]   ;;  %v3978_v54 = vld [vmem:[%s5117_s5 + $0x50] sm:$0xff]   ;;  %1819 = vst.msk [vmem:[#allocation6 + $0x18] sm:$0xff] %vm1811_vm4, %v4208_v4 }
  0x22   : > { %3575 = vmatpush3.bf16.msra.mxu0 %v3955_v14  ;;  %3595 = vmatpush3.bf16.msra.mxu1 %v3956_v15  ;;  %v3974_v50 = vld [vmem:[%s5117_s5 + $0x60] sm:$0xff]   ;;  %v3979_v55 = vld [vmem:[%s5116_s4 + $0x48] sm:$0xff]   ;;  %v3983_v59 = vld [vmem:[%s5116_s4 + $0xb8] sm:$0xff]   ;;  %p4132_p13 = pnand %p4131_p12, %p4323_p4 }
  0x23   : > { %3576 = vmatprep.subr.bf16.mxu0 %v4208_v4  ;;  %3596 = vmatprep.subr.bf16.mxu1 %v4208_v4  ;;  %v3980_v56 = vld [vmem:[%s5117_s5 + $0x48] sm:$0xff]   ;;  %v3981_v57 = vld [vmem:[%s5116_s4 + $0x40] sm:$0xff]   ;;  %v3984_v60 = vld [vmem:[%s5117_s5 + $0xb8] sm:$0xff]  }
  0x24   : > { %v3982_v58 = vld [vmem:[%s5117_s5 + $0x40] sm:$0xff]   ;;  %v3985_v61 = vld [vmem:[%s5116_s4 + $0xb0] sm:$0xff]   ;;  %v3987_v63 = vld [vmem:[%s5116_s4 + $0xa8] sm:$0xff]   ;;  %p4133_p0 = pneg %p4132_p13 }
  0x25   : > { %v3986_v62 = vld [vmem:[%s5117_s5 + $0xb0] sm:$0xff]   ;;  %v3989_v1 = vld [vmem:[%s5116_s4 + $0xa0] sm:$0xff]   ;;  %v3991_v3 = vld [vmem:[%s5116_s4 + $0x98] sm:$0xff]  }
  0x26   : > { %3577 = vmatpush3.bf16.msra.mxu0 %v3957_v16  ;;  %3597 = vmatpush3.bf16.msra.mxu1 %v3958_v17  ;;  %v3990_v2 = vld [vmem:[%s5117_s5 + $0xa0] sm:$0xff]   ;;  %v3992_v5 = vld [vmem:[%s5117_s5 + $0x98] sm:$0xff]   ;;  %v4001_v14 = vld [vmem:[%s5116_s4 + $0xf0] sm:$0xff]  }
  0x27   : > { %3578 = vmatprep.subr.bf16.mxu0 %v4208_v4  ;;  %3598 = vmatprep.subr.bf16.mxu1 %v4208_v4  ;;  %v4002_v15 = vld [vmem:[%s5117_s5 + $0xf0] sm:$0xff]   ;;  %v4003_v16 = vld [vmem:[%s5116_s4 + $0xe8] sm:$0xff]  }
  0x28   : > { %v4004_v17 = vld [vmem:[%s5117_s5 + $0xe8] sm:$0xff]  }
  0x2a   : > { %3579 = vmatpush3.bf16.msra.mxu0 %v3959_v18  ;;  %3599 = vmatpush3.bf16.msra.mxu1 %v3960_v19  ;;  %v4005_v18 = vld [vmem:[%s5116_s4 + $0xe0] sm:$0xff]  }
  0x2b   : > { %3580 = vmatprep.subr.bf16.mxu0 %v4208_v4  ;;  %3600 = vmatprep.subr.bf16.mxu1 %v4208_v4  ;;  %v4006_v19 = vld [vmem:[%s5117_s5 + $0xe0] sm:$0xff]  }
  0x2e   : > { %3581 = vmatpush3.bf16.msra.mxu0 %v3961_v20  ;;  %3601 = vmatpush3.bf16.msra.mxu1 %v3962_v21  ;;  %v4007_v20 = vld [vmem:[%s5116_s4 + $0xd8] sm:$0xff]  }
  0x2f   : > { %3582 = vmatprep.subr.bf16.mxu0 %v4208_v4  ;;  %3602 = vmatprep.subr.bf16.mxu1 %v4208_v4  ;;  %v4008_v21 = vld [vmem:[%s5117_s5 + $0xd8] sm:$0xff]  }
  0x32   : > { %3583 = vmatpush3.bf16.msra.mxu0 %v3963_v22  ;;  %3603 = vmatpush3.bf16.msra.mxu1 %v3964_v23  ;;  %v4009_v22 = vld [vmem:[%s5116_s4 + $0xd0] sm:$0xff]  }
  0x33   : > { %3584 = vmatprep.subr.bf16.mxu0 %v4208_v4  ;;  %3604 = vmatprep.subr.bf16.mxu1 %v4208_v4  ;;  %v4010_v23 = vld [vmem:[%s5117_s5 + $0xd0] sm:$0xff]  }
  0x36   : > { %3585 = vmatpush3.bf16.msra.mxu0 %v3965_v24  ;;  %3605 = vmatpush3.bf16.msra.mxu1 %v3966_v25  ;;  %v4011_v24 = vld [vmem:[%s5116_s4 + $0xc8] sm:$0xff]  }
  0x37   : > { %3610 = vmatprep.subr.bf16.mxu0 %v4208_v4  ;;  %3630 = vmatprep.subr.bf16.mxu1 %v4208_v4  ;;  %v4012_v25 = vld [vmem:[%s5117_s5 + $0xc8] sm:$0xff]  }
  0xa6   : > { %v1350_v6 = vpop.xlane.xlu1 %1349  ;;  %v459_v7 = vpop.xlane.xlu0 %458 }
  0xa7   : > { %v1352_v8 = vmul.f32 0.0078125, %v1350_v6  ;;  %v461_v9 = vmul.f32 0.0078125, %v459_v7  ;;  %v3993_v6 = vld [vmem:[%s5116_s4 + $0x90] sm:$0xff]  }
  0xa8   : > { %v3994_v7 = vld [vmem:[%s5117_s5 + $0x90] sm:$0xff]  }
  0xa9   : > { %v1353_v10 = vsub.f32 %v1348_v0, %v1352_v8  ;;  %v462_v11 = vsub.f32 %v1348_v0, %v461_v9  ;;  %v3988_v0 = vld [vmem:[%s5117_s5 + $0xa8] sm:$0xff]  }
  0xaa   : > { %v3995_v8 = vld [vmem:[%s5116_s4 + $0x88] sm:$0xff]  }
  0xab   : > { %v1354_v12 = vmul.f32 %v1353_v10, %v1353_v10  ;;  %v463_v13 = vmul.f32 %v462_v11, %v462_v11  ;;  %v3996_v9 = vld [vmem:[%s5117_s5 + $0x88] sm:$0xff]  }
  0xad   : > { %1355 = vadd.xlane.f32.xlu1 %v1354_v12  ;;  %464 = vadd.xlane.f32.xlu0 %v463_v13  ;;  %v3999_v12 = vld [vmem:[%s5116_s4 + $0xf8] sm:$0xff]  }
  0xae   : > { %v4000_v13 = vld [vmem:[%s5117_s5 + $0xf8] sm:$0xff]  }
 0x136   : > { %v1356_v26 = vpop.xlane.xlu1 %1355  ;;  %v465_v27 = vpop.xlane.xlu0 %464 }
 0x137   : > { %v1357_v28 = vmul.f32 0.0078125, %v1356_v26  ;;  %v466_v29 = vmul.f32 0.0078125, %v465_v27  ;;  %v4013_v26 = vld [vmem:[%s5116_s4 + $0xc0] sm:$0xff]  }
 0x138   : > { %v4014_v27 = vld [vmem:[%s5117_s5 + $0xc0] sm:$0xff]  }
 0x139   : > { %v1358_v30 = vadd.f32 1e-05, %v1357_v28  ;;  %v467_v31 = vadd.f32 1e-05, %v466_v29  ;;  %v4015_v28 = vld [vmem:[%s5115_s3 + $0x38] sm:$0xff]  }
 0x13a   : > { %v4016_v29 = vld [vmem:[%s5115_s3 + $0x78] sm:$0xff]  }
 0x13b   : > { %4095 = vrsqrt.f32 %v1358_v30  ;;  %v4017_v30 = vld [vmem:[%s5115_s3 + $0x30] sm:$0xff]  }
 0x13c   : > { %4097 = vrsqrt.f32 %v467_v31  ;;  %v4018_v31 = vld [vmem:[%s5115_s3 + $0x70] sm:$0xff]  }
 0x148   : > { %v4096_v32 = vpop.eup %4095 }
 0x149   : > { %v4098_v34 = vpop.eup %4097  ;;  %v1360_v35 = vmul.f32 %v4096_v32, %v1353_v10  ;;  %v3997_v10 = vld [vmem:[%s5116_s4 + $0x80] sm:$0xff]   ;;  %v4019_v32 = vld [vmem:[%s5115_s3 + $0x28] sm:$0xff]  }
 0x14a   : > { %v469_v37 = vmul.f32 %v4098_v34, %v462_v11  ;;  %v3998_v11 = vld [vmem:[%s5117_s5 + $0x80] sm:$0xff]  }
 0x14b   : > { %v1367_v38 = vmul.f32 %v3410_v33, %v1360_v35  ;;  %v4021_v34 = vld [vmem:[%s5115_s3 + $0x20] sm:$0xff]  }
 0x14c   : > { %v476_v39 = vmul.f32 %v3410_v33, %v469_v37  ;;  %v4020_v33 = vld [vmem:[%s5115_s3 + $0x68] sm:$0xff]   ;;  %v4022_v35 = vld [vmem:[%s5115_s3 + $0x60] sm:$0xff]   ;;  %v4024_v37 = vld [vmem:[%s5115_s3 + $0x58] sm:$0xff]  }
 0x14d   : > { %v4422_v40 = vadd.f32 %v3411_v36, %v1367_v38  ;;  %v4025_v38 = vld [vmem:[%s5115_s3 + $0x10] sm:$0xff]  }
 0x14e   : > { %v483_v41 = vadd.f32 %v3411_v36, %v476_v39  ;;  %v4023_v36 = vld [vmem:[%s5115_s3 + $0x18] sm:$0xff]   ;;  %v4026_v39 = vld [vmem:[%s5115_s3 + $0x50] sm:$0xff]  }
 0x150   : > { %v4430_v44 = vpack.c.bf16 %v483_v41, %v483_v41  ;;  %v4027_v41 = vld [vmem:[%s5115_s3 + $0x8] sm:$0xff]  }
 0x152   : > { %3587 = vmatmul.mubr.bf16.vlgmr.msra.gmra.mxu0 %v4430_v44  ;;  %3607 = vmatmul.mubr.bf16.vlgmr.msra.gmra.mxu1 %v4430_v44 }
 0x153   : > { %3611 = vmatpush3.bf16.msra.mxu0 %v3967_v42  ;;  %3631 = vmatpush3.bf16.msra.mxu1 %v3968_v43  ;;  %v4028_v42 = vld [vmem:[%s5115_s3 + $0x48] sm:$0xff]   ;;  %v4029_v43 = vld [vmem:[%s5115_s3] sm:$0xff]  }
 0x154   : > { %3612 = vmatprep.subr.bf16.mxu0 %v4208_v4  ;;  %3632 = vmatprep.subr.bf16.mxu1 %v4208_v4 }
 0x155   : > { %3626 = vmatprep.mubr.msk.bf16.mxu0 %vm4209_vm0, %v4208_v4  ;;  %3646 = vmatprep.mubr.msk.bf16.mxu1 %vm4209_vm0, %v4208_v4 }
 0x157   : > { %3613 = vmatpush3.bf16.msra.mxu0 %v3969_v45  ;;  %3633 = vmatpush3.bf16.msra.mxu1 %v3970_v46  ;;  %v4031_v45 = vld [vmem:[%s5115_s3 + $0xb8] sm:$0xff]  }
 0x158   : > { %3614 = vmatprep.subr.bf16.mxu0 %v4208_v4  ;;  %3634 = vmatprep.subr.bf16.mxu1 %v4208_v4  ;;  %v4032_v46 = vld [vmem:[%s5115_s3 + $0xf8] sm:$0xff]  }
 0x15b   : > { %3615 = vmatpush3.bf16.msra.mxu0 %v3971_v47  ;;  %3635 = vmatpush3.bf16.msra.mxu1 %v3972_v48  ;;  %v1375_v47 = vpack.c.bf16 %v4422_v40, %v4422_v40  ;;  %v4033_v48 = vld [vmem:[%s5115_s3 + $0xb0] sm:$0xff]   ;;  %v4035_v40 = vld [vmem:[%s5115_s3 + $0xa8] sm:$0xff]  }
 0x15c   : > { %3616 = vmatprep.subr.bf16.mxu0 %v4208_v4  ;;  %3636 = vmatprep.subr.bf16.mxu1 %v4208_v4 }
 0x15f   : > { %3617 = vmatpush3.bf16.msra.mxu0 %v3973_v49  ;;  %3637 = vmatpush3.bf16.msra.mxu1 %v3974_v50  ;;  %v4034_v49 = vld [vmem:[%s5115_s3 + $0xf0] sm:$0xff]   ;;  %v4036_v50 = vld [vmem:[%s5115_s3 + $0xe8] sm:$0xff]  }
 0x160   : > { %3618 = vmatprep.subr.bf16.mxu0 %v4208_v4  ;;  %3638 = vmatprep.subr.bf16.mxu1 %v4208_v4 }
 0x163   : > { %3619 = vmatpush3.bf16.msra.mxu0 %v3975_v51  ;;  %3639 = vmatpush3.bf16.msra.mxu1 %v3976_v52  ;;  %v4037_v51 = vld [vmem:[%s5115_s3 + $0xa0] sm:$0xff]  }
 0x164   : > { %3620 = vmatprep.subr.bf16.mxu0 %v4208_v4  ;;  %3640 = vmatprep.subr.bf16.mxu1 %v4208_v4  ;;  %v4038_v52 = vld [vmem:[%s5115_s3 + $0xe0] sm:$0xff]  }
 0x167   : > { %3621 = vmatpush3.bf16.msra.mxu0 %v3977_v53  ;;  %3641 = vmatpush3.bf16.msra.mxu1 %v3978_v54  ;;  %v4039_v53 = vld [vmem:[%s5115_s3 + $0x98] sm:$0xff]  }
 0x168   : > { %3622 = vmatprep.subr.bf16.mxu0 %v4208_v4  ;;  %3642 = vmatprep.subr.bf16.mxu1 %v4208_v4  ;;  %v4040_v54 = vld [vmem:[%s5115_s3 + $0xd8] sm:$0xff]  }
 0x16b   : > { %3623 = vmatpush3.bf16.msra.mxu0 %v3979_v55  ;;  %3643 = vmatpush3.bf16.msra.mxu1 %v3980_v56  ;;  %v4041_v55 = vld [vmem:[%s5115_s3 + $0x90] sm:$0xff]  }
 0x16c   : > { %3624 = vmatprep.subr.bf16.mxu0 %v4208_v4  ;;  %3644 = vmatprep.subr.bf16.mxu1 %v4208_v4  ;;  %v4042_v56 = vld [vmem:[%s5115_s3 + $0xd0] sm:$0xff]  }
 0x16f   : > { %3625 = vmatpush3.bf16.msra.mxu0 %v3981_v57  ;;  %3645 = vmatpush3.bf16.msra.mxu1 %v3982_v58  ;;  %v4043_v57 = vld [vmem:[%s5115_s3 + $0x88] sm:$0xff]  }
 0x170   : > { %3650 = vmatprep.subr.bf16.mxu0 %v4208_v4  ;;  %3670 = vmatprep.subr.bf16.mxu1 %v4208_v4  ;;  %v4044_v58 = vld [vmem:[%s5115_s3 + $0xc8] sm:$0xff]  }
 0x172   : > { %3627 = vmatmul.mubr.bf16.vlgmr.msra.gmra.mxu0 %v4430_v44  ;;  %3647 = vmatmul.mubr.bf16.vlgmr.msra.gmra.mxu1 %v4430_v44 }
 0x173   : > { %3651 = vmatpush3.bf16.msra.mxu0 %v3983_v59  ;;  %3671 = vmatpush3.bf16.msra.mxu1 %v3984_v60  ;;  %v4045_v59 = vld [vmem:[%s5115_s3 + $0x80] sm:$0xff]  }
 0x174   : > { %3652 = vmatprep.subr.bf16.mxu0 %v4208_v4  ;;  %3672 = vmatprep.subr.bf16.mxu1 %v4208_v4  ;;  %v4046_v60 = vld [vmem:[%s5115_s3 + $0xc0] sm:$0xff]  }
 0x175   : > { %3666 = vmatprep.mubr.msk.bf16.mxu0 %vm4209_vm0, %v4208_v4  ;;  %3686 = vmatprep.mubr.msk.bf16.mxu1 %vm4209_vm0, %v4208_v4 }
 0x177   : > { %3653 = vmatpush3.bf16.msra.mxu0 %v3985_v61  ;;  %3673 = vmatpush3.bf16.msra.mxu1 %v3986_v62 }
 0x178   : > { %3654 = vmatprep.subr.bf16.mxu0 %v4208_v4  ;;  %3674 = vmatprep.subr.bf16.mxu1 %v4208_v4 }
 0x17b   : > { %3655 = vmatpush3.bf16.msra.mxu0 %v3987_v63  ;;  %3675 = vmatpush3.bf16.msra.mxu1 %v3988_v0 }
 0x17c   : > { %3656 = vmatprep.subr.bf16.mxu0 %v4208_v4  ;;  %3676 = vmatprep.subr.bf16.mxu1 %v4208_v4 }
 0x17f   : > { %3657 = vmatpush3.bf16.msra.mxu0 %v3989_v1  ;;  %3677 = vmatpush3.bf16.msra.mxu1 %v3990_v2 }
 0x180   : > { %3658 = vmatprep.subr.bf16.mxu0 %v4208_v4  ;;  %3678 = vmatprep.subr.bf16.mxu1 %v4208_v4 }
 0x183   : > { %3659 = vmatpush3.bf16.msra.mxu0 %v3991_v3  ;;  %3679 = vmatpush3.bf16.msra.mxu1 %v3992_v5 }
 0x184   : > { %3660 = vmatprep.subr.bf16.mxu0 %v4208_v4  ;;  %3680 = vmatprep.subr.bf16.mxu1 %v4208_v4 }
 0x187   : > { %3661 = vmatpush3.bf16.msra.mxu0 %v3993_v6  ;;  %3681 = vmatpush3.bf16.msra.mxu1 %v3994_v7 }
 0x188   : > { %3662 = vmatprep.subr.bf16.mxu0 %v4208_v4  ;;  %3682 = vmatprep.subr.bf16.mxu1 %v4208_v4 }
 0x18b   : > { %3663 = vmatpush3.bf16.msra.mxu0 %v3995_v8  ;;  %3683 = vmatpush3.bf16.msra.mxu1 %v3996_v9 }
 0x18c   : > { %3664 = vmatprep.subr.bf16.mxu0 %v4208_v4  ;;  %3684 = vmatprep.subr.bf16.mxu1 %v4208_v4 }
 0x18f   : > { %3665 = vmatpush3.bf16.msra.mxu0 %v3997_v10  ;;  %3685 = vmatpush3.bf16.msra.mxu1 %v3998_v11 }
 0x190   : > { %3690 = vmatprep.subr.bf16.mxu0 %v4208_v4  ;;  %3710 = vmatprep.subr.bf16.mxu1 %v4208_v4 }
 0x192   : > { %3667 = vmatmul.mubr.bf16.vlgmr.msra.gmra.mxu0 %v4430_v44  ;;  %3687 = vmatmul.mubr.bf16.vlgmr.msra.gmra.mxu1 %v4430_v44 }
 0x193   : > { %3691 = vmatpush3.bf16.msra.mxu0 %v3999_v12  ;;  %3711 = vmatpush3.bf16.msra.mxu1 %v4000_v13 }
 0x194   : > { %3692 = vmatprep.subr.bf16.mxu0 %v4208_v4  ;;  %3712 = vmatprep.subr.bf16.mxu1 %v4208_v4 }
 0x195   : > { %3706 = vmatprep.mubr.msk.bf16.mxu0 %vm4209_vm0, %v4208_v4  ;;  %3726 = vmatprep.mubr.msk.bf16.mxu1 %vm4209_vm0, %v4208_v4 }
 0x197   : > { %3693 = vmatpush3.bf16.msra.mxu0 %v4001_v14  ;;  %3713 = vmatpush3.bf16.msra.mxu1 %v4002_v15 }
 0x198   : > { %3694 = vmatprep.subr.bf16.mxu0 %v4208_v4  ;;  %3714 = vmatprep.subr.bf16.mxu1 %v4208_v4 }
 0x19b   : > { %3695 = vmatpush3.bf16.msra.mxu0 %v4003_v16  ;;  %3715 = vmatpush3.bf16.msra.mxu1 %v4004_v17 }
 0x19c   : > { %3696 = vmatprep.subr.bf16.mxu0 %v4208_v4  ;;  %3716 = vmatprep.subr.bf16.mxu1 %v4208_v4 }
 0x19f   : > { %3697 = vmatpush3.bf16.msra.mxu0 %v4005_v18  ;;  %3717 = vmatpush3.bf16.msra.mxu1 %v4006_v19 }
 0x1a0   : > { %3698 = vmatprep.subr.bf16.mxu0 %v4208_v4  ;;  %3718 = vmatprep.subr.bf16.mxu1 %v4208_v4 }
 0x1a3   : > { %3699 = vmatpush3.bf16.msra.mxu0 %v4007_v20  ;;  %3719 = vmatpush3.bf16.msra.mxu1 %v4008_v21 }
 0x1a4   : > { %3700 = vmatprep.subr.bf16.mxu0 %v4208_v4  ;;  %3720 = vmatprep.subr.bf16.mxu1 %v4208_v4 }
 0x1a7   : > { %3701 = vmatpush3.bf16.msra.mxu0 %v4009_v22  ;;  %3721 = vmatpush3.bf16.msra.mxu1 %v4010_v23 }
 0x1a8   : > { %3702 = vmatprep.subr.bf16.mxu0 %v4208_v4  ;;  %3722 = vmatprep.subr.bf16.mxu1 %v4208_v4 }
 0x1ab   : > { %3703 = vmatpush3.bf16.msra.mxu0 %v4011_v24  ;;  %3723 = vmatpush3.bf16.msra.mxu1 %v4012_v25 }
 0x1ac   : > { %3704 = vmatprep.subr.bf16.mxu0 %v4208_v4  ;;  %3724 = vmatprep.subr.bf16.mxu1 %v4208_v4 }
 0x1af   : > { %3705 = vmatpush3.bf16.msra.mxu0 %v4013_v26  ;;  %3725 = vmatpush3.bf16.msra.mxu1 %v4014_v27 }
 0x1b0   : > { %3730 = vmatprep.subr.bf16.mxu0 %v4208_v4  ;;  %3750 = vmatprep.subr.bf16.mxu1 %v4208_v4 }
 0x1b2   : > { %3707 = vmatmul.mubr.bf16.vlgmr.msra.gmra.mxu0 %v4430_v44  ;;  %3727 = vmatmul.mubr.bf16.vlgmr.msra.gmra.mxu1 %v4430_v44  ;;  %v4030_v44 = vld [vmem:[%s5115_s3 + $0x40] sm:$0xff]  }
 0x1b3   : > { %3731 = vmatpush3.bf16.msra.mxu0 %v4015_v28  ;;  %3751 = vmatpush3.bf16.msra.mxu1 %v4016_v29 }
 0x1b4   : > { %3732 = vmatprep.subr.bf16.mxu0 %v4208_v4  ;;  %3752 = vmatprep.subr.bf16.mxu1 %v4208_v4 }
 0x1b5   : > { %3746 = vmatprep.mubr.msk.bf16.mxu0 %vm4209_vm0, %v4208_v4  ;;  %3766 = vmatprep.mubr.msk.bf16.mxu1 %vm4209_vm0, %v4208_v4 }
 0x1b7   : > { %3733 = vmatpush3.bf16.msra.mxu0 %v4017_v30  ;;  %3753 = vmatpush3.bf16.msra.mxu1 %v4018_v31 }
 0x1b8   : > { %3734 = vmatprep.subr.bf16.mxu0 %v4208_v4  ;;  %3754 = vmatprep.subr.bf16.mxu1 %v4208_v4 }
 0x1bb   : > { %3735 = vmatpush3.bf16.msra.mxu0 %v4019_v32  ;;  %3755 = vmatpush3.bf16.msra.mxu1 %v4020_v33 }
 0x1bc   : > { %3736 = vmatprep.subr.bf16.mxu0 %v4208_v4  ;;  %3756 = vmatprep.subr.bf16.mxu1 %v4208_v4 }
 0x1bf   : > { %3737 = vmatpush3.bf16.msra.mxu0 %v4021_v34  ;;  %3757 = vmatpush3.bf16.msra.mxu1 %v4022_v35 }
 0x1c0   : > { %3738 = vmatprep.subr.bf16.mxu0 %v4208_v4  ;;  %3758 = vmatprep.subr.bf16.mxu1 %v4208_v4 }
 0x1c3   : > { %3739 = vmatpush3.bf16.msra.mxu0 %v4023_v36  ;;  %3759 = vmatpush3.bf16.msra.mxu1 %v4024_v37 }
 0x1c4   : > { %3740 = vmatprep.subr.bf16.mxu0 %v4208_v4  ;;  %3760 = vmatprep.subr.bf16.mxu1 %v4208_v4 }
 0x1c7   : > { %3741 = vmatpush3.bf16.msra.mxu0 %v4025_v38  ;;  %3761 = vmatpush3.bf16.msra.mxu1 %v4026_v39 }
 0x1c8   : > { %3742 = vmatprep.subr.bf16.mxu0 %v4208_v4  ;;  %3762 = vmatprep.subr.bf16.mxu1 %v4208_v4 }
 0x1cb   : > { %3743 = vmatpush3.bf16.msra.mxu0 %v4027_v41  ;;  %3763 = vmatpush3.bf16.msra.mxu1 %v4028_v42 }
 0x1cc   : > { %3744 = vmatprep.subr.bf16.mxu0 %v4208_v4  ;;  %3764 = vmatprep.subr.bf16.mxu1 %v4208_v4 }
 0x1cf   : > { %3745 = vmatpush3.bf16.msra.mxu0 %v4029_v43  ;;  %3765 = vmatpush3.bf16.msra.mxu1 %v4030_v44 }
 0x1d0   : > { %3770 = vmatprep.subr.bf16.mxu0 %v4208_v4  ;;  %3790 = vmatprep.subr.bf16.mxu1 %v4208_v4 }
 0x1d2   : > { %3747 = vmatmul.mubr.bf16.vlgmr.msra.gmra.mxu0 %v1375_v47  ;;  %3767 = vmatmul.mubr.bf16.vlgmr.msra.gmra.mxu1 %v1375_v47 }
 0x1d3   : > { %3771 = vmatpush3.bf16.msra.mxu0 %v4031_v45  ;;  %3791 = vmatpush3.bf16.msra.mxu1 %v4032_v46 }
 0x1d4   : > { %3772 = vmatprep.subr.bf16.mxu0 %v4208_v4  ;;  %3792 = vmatprep.subr.bf16.mxu1 %v4208_v4 }
 0x1d5   : > { %3786 = vmatprep.mubr.msk.bf16.mxu0 %vm4209_vm0, %v4208_v4  ;;  %3806 = vmatprep.mubr.msk.bf16.mxu1 %vm4209_vm0, %v4208_v4 }
 0x1d7   : > { %3773 = vmatpush3.bf16.msra.mxu0 %v4033_v48  ;;  %3793 = vmatpush3.bf16.msra.mxu1 %v4034_v49 }
 0x1d8   : > { %3774 = vmatprep.subr.bf16.mxu0 %v4208_v4  ;;  %3794 = vmatprep.subr.bf16.mxu1 %v4208_v4 }
 0x1db   : > { %3775 = vmatpush3.bf16.msra.mxu0 %v4035_v40  ;;  %3795 = vmatpush3.bf16.msra.mxu1 %v4036_v50 }
 0x1dc   : > { %3776 = vmatprep.subr.bf16.mxu0 %v4208_v4  ;;  %3796 = vmatprep.subr.bf16.mxu1 %v4208_v4 }
 0x1df   : > { %3777 = vmatpush3.bf16.msra.mxu0 %v4037_v51  ;;  %3797 = vmatpush3.bf16.msra.mxu1 %v4038_v52 }
 0x1e0   : > { %3778 = vmatprep.subr.bf16.mxu0 %v4208_v4  ;;  %3798 = vmatprep.subr.bf16.mxu1 %v4208_v4 }
 0x1e3   : > { %3779 = vmatpush3.bf16.msra.mxu0 %v4039_v53  ;;  %3799 = vmatpush3.bf16.msra.mxu1 %v4040_v54 }
 0x1e4   : > { %3780 = vmatprep.subr.bf16.mxu0 %v4208_v4  ;;  %3800 = vmatprep.subr.bf16.mxu1 %v4208_v4 }
 0x1e7   : > { %3781 = vmatpush3.bf16.msra.mxu0 %v4041_v55  ;;  %3801 = vmatpush3.bf16.msra.mxu1 %v4042_v56 }
 0x1e8   : > { %3782 = vmatprep.subr.bf16.mxu0 %v4208_v4  ;;  %3802 = vmatprep.subr.bf16.mxu1 %v4208_v4 }
 0x1eb   : > { %3783 = vmatpush3.bf16.msra.mxu0 %v4043_v57  ;;  %3803 = vmatpush3.bf16.msra.mxu1 %v4044_v58 }
 0x1ec   : > { %3784 = vmatprep.subr.bf16.mxu0 %v4208_v4  ;;  %3804 = vmatprep.subr.bf16.mxu1 %v4208_v4 }
 0x1ef   : > { %3785 = vmatpush3.bf16.msra.mxu0 %v4045_v59  ;;  %3805 = vmatpush3.bf16.msra.mxu1 %v4046_v60 }
 0x1f0   : > { %3810 = vmatprep.subr.bf16.mxu0 %v4208_v4  ;;  %3816 = vmatprep.subr.bf16.mxu1 %v4208_v4 }
 0x1f2   : > { %3787 = vmatmul.mubr.bf16.vlgmr.msra.gmra.mxu0 %v1375_v47  ;;  %3807 = vmatmul.mubr.bf16.vlgmr.msra.gmra.mxu1 %v1375_v47 }
 0x1f3   : > { %3812 = vmatprep.mubr.msk.bf16.mxu0 %vm4209_vm0, %v4208_v4  ;;  %3818 = vmatprep.mubr.msk.bf16.mxu1 %vm4209_vm0, %v4208_v4 }
 0x212   : > { %v583_v61 = vpop.f32.mrf.mxu0  ;;  %v690_v62 = vpop.f32.mrf.mxu1 }
 0x213   : > { %v589_v63 = vpack.c.bf16 %v583_v61, %v583_v61  ;;  %v696_v0 = vpack.c.bf16 %v690_v62, %v690_v62 }
 0x214   : > { %v3588_v1 = vpop.f32.mrf.mxu0  ;;  %v3608_v2 = vpop.f32.mrf.mxu1 }
 0x215   : > { %591 = vst.msk [vmem:[#allocation2] sm:$0xf] %vm590_vm2, %v589_v63  ;;  %697 = vst.msk [vmem:[#allocation3] sm:$0xf] %vm590_vm2, %v696_v0 }
 0x216   : > { %v586_v3 = vpop.f32.mrf.mxu0  ;;  %v693_v5 = vpop.f32.mrf.mxu1 }
 0x218   : > { %v3589_v6 = vpop.f32.mrf.mxu0  ;;  %v3609_v7 = vpop.f32.mrf.mxu1 }
 0x21c   : > { %v1831_v8 = vld [vmem:[#allocation2] sm:$0xf]  ;;  %v1835_v5 = vld [vmem:[#allocation3] sm:$0xf] }
 0x21d   : > { %v1843_v9 = vsel %vm1820_vm1, %v1831_v8, 0 }
 0x21e   : > { %3811 = vmatpush3.bf16.xpose.msra.mxu0 %v1843_v9  ;;  %v2158_v9 = vsel %vm2156_vm3, %v1835_v5, 0 }
 0x21f   : > { %3822 = vmatprep.subr.bf16.mxu0 %v4208_v4 }
 0x232   : > { %v797_v10 = vpop.f32.mrf.mxu0  ;;  %v905_v11 = vpop.f32.mrf.mxu1 }
 0x233   : > { %v803_v12 = vpack.c.bf16 %v797_v10, %v797_v10  ;;  %v911_v13 = vpack.c.bf16 %v905_v11, %v905_v11  ;;  %v4210_v11 = vmov -1e+30  }
 0x234   : > { %v3628_v14 = vpop.f32.mrf.mxu0  ;;  %v3648_v15 = vpop.f32.mrf.mxu1  ;;  %1813 = vst.msk [vmem:[#allocation5 + $0x8] sm:$0xff] %vm1811_vm4, %v4210_v11  ;;  %1812 = vst.msk [vmem:[#allocation5] sm:$0xff] %vm1811_vm4, %v4210_v11 }
 0x235   : > { %805 = vst.msk [vmem:[#allocation2 + $0x4] sm:$0xf] %vm590_vm2, %v803_v12  ;;  %913 = vst.msk [vmem:[#allocation3 + $0x4] sm:$0xf] %vm590_vm2, %v911_v13  ;;  %v471_v12 = vlaneseq }
 0x236   : > { %v800_v16 = vpop.f32.mrf.mxu0  ;;  %v908_v17 = vpop.f32.mrf.mxu1  ;;  %1814 = vst.msk [vmem:[#allocation5 + $0x10] sm:$0xff] %vm1811_vm4, %v4210_v11  ;;  %1815 = vst.msk [vmem:[#allocation5 + $0x18] sm:$0xff] %vm1811_vm4, %v4210_v11 }
 0x237   : > { %v4836_v13 = vshrl.u32 %v471_v12, 7  ;;  %v1830_v14 = vand.u32 127, %v471_v12 }
 0x238   : > { %v3629_v18 = vpop.f32.mrf.mxu0  ;;  %v3649_v19 = vpop.f32.mrf.mxu1 }
 0x239   : > { %vm2023_vm5 = vcmp.gt.s32.totalorder %v1830_v14, %v4836_v13 }
 0x23c   : > { %v1832_v20 = vld [vmem:[#allocation2 + $0x4] sm:$0xf]  ;;  %v1836_v6 = vld [vmem:[#allocation3 + $0x4] sm:$0xf] }
 0x23d   : > { %v1889_v21 = vsel %vm1820_vm1, %v1832_v20, 0  ;;  %v2204_v10 = vsel %vm2156_vm3, %v1836_v6, 0 }
 0x23e   : > { %3817 = vmatpush3.bf16.xpose.msra.mxu1 %v1889_v21 }
 0x23f   : > { %3828 = vmatprep.subr.bf16.mxu1 %v4208_v4 }
 0x252   : > { %v1013_v22 = vpop.f32.mrf.mxu0  ;;  %v1121_v23 = vpop.f32.mrf.mxu1 }
 0x253   : > { %v1019_v24 = vpack.c.bf16 %v1013_v22, %v1013_v22  ;;  %v1127_v25 = vpack.c.bf16 %v1121_v23, %v1121_v23 }
 0x254   : > { %v3668_v26 = vpop.f32.mrf.mxu0  ;;  %v3688_v27 = vpop.f32.mrf.mxu1 }
 0x255   : > { %1021 = vst.msk [vmem:[#allocation2 + $0x8] sm:$0xf] %vm590_vm2, %v1019_v24  ;;  %1129 = vst.msk [vmem:[#allocation3 + $0x8] sm:$0xf] %vm590_vm2, %v1127_v25  ;;  %v4211_v27 = vmov 0  }
 0x256   : > { %v1016_v28 = vpop.f32.mrf.mxu0  ;;  %v1124_v29 = vpop.f32.mrf.mxu1  ;;  %3950 = vset.pattern.permute.xlu1 %v4211_v27  ;;  %3949 = vset.pattern.permute.xlu0 %v4211_v27 }
 0x258   : > { %v3669_v30 = vpop.f32.mrf.mxu0  ;;  %v3689_v31 = vpop.f32.mrf.mxu1 }
 0x25c   : > { %v1833_v52 = vld [vmem:[#allocation2 + $0x8] sm:$0xf] }
 0x25d   : > { %v1935_v56 = vsel %vm1820_vm1, %v1833_v52, 0 }
 0x272   : > { %v1229_v32 = vpop.f32.mrf.mxu0  ;;  %v1337_v33 = vpop.f32.mrf.mxu1 }
 0x273   : > { %v1235_v34 = vpack.c.bf16 %v1229_v32, %v1229_v32  ;;  %v1343_v35 = vpack.c.bf16 %v1337_v33, %v1337_v33 }
 0x274   : > { %v3708_v36 = vpop.f32.mrf.mxu0  ;;  %v3728_v37 = vpop.f32.mrf.mxu1 }
 0x275   : > { %1237 = vst.msk [vmem:[#allocation2 + $0xc] sm:$0xf] %vm590_vm2, %v1235_v34  ;;  %1345 = vst.msk [vmem:[#allocation3 + $0xc] sm:$0xf] %vm590_vm2, %v1343_v35 }
 0x276   : > { %v1232_v38 = vpop.f32.mrf.mxu0  ;;  %v1340_v39 = vpop.f32.mrf.mxu1 }
 0x278   : > { %v3709_v41 = vpop.f32.mrf.mxu0  ;;  %v3729_v42 = vpop.f32.mrf.mxu1 }
 0x279   : > { %v4859_v41 = vld [vmem:[#allocation5 + $0x8] sm:$0xff]  ;;  %v2028_v42 = vld [vmem:[#allocation5] sm:$0xff] }
 0x27c   : > { %v1834_v53 = vld [vmem:[#allocation2 + $0xc] sm:$0xf] }
 0x27d   : > { %v1981_v57 = vsel %vm1820_vm1, %v1834_v53, 0 }
 0x292   : > { %v1474_v43 = vpop.f32.mrf.mxu0  ;;  %v1582_v44 = vpop.f32.mrf.mxu1 }
 0x293   : > { %v1480_v45 = vpack.c.bf16 %v1474_v43, %v1474_v43  ;;  %v1588_v46 = vpack.c.bf16 %v1582_v44, %v1582_v44 }
 0x294   : > { %v3748_v47 = vpop.f32.mrf.mxu0  ;;  %v3768_v48 = vpop.f32.mrf.mxu1 }
 0x295   : > { %1482 = vst.msk [vmem:[#allocation4] sm:$0xf] %vm590_vm2, %v1480_v45  ;;  %1590 = vst.msk [vmem:[#allocation4 + $0x4] sm:$0xf] %vm590_vm2, %v1588_v46 }
 0x296   : > { %v1477_v49 = vpop.f32.mrf.mxu0  ;;  %v1585_v40 = vpop.f32.mrf.mxu1 }
 0x297   : > { %v4870_v49 = vld [vmem:[#allocation5 + $0x18] sm:$0xff]  ;;  %v4872_v40 = vld [vmem:[#allocation5 + $0x10] sm:$0xff] }
 0x298   : > { %v3749_v50 = vpop.f32.mrf.mxu0  ;;  %v3769_v51 = vpop.f32.mrf.mxu1 }
 0x29c   : > { %v1807_v54 = vld [vmem:[#allocation4] sm:$0xf]  ;;  %v1808_v55 = vld [vmem:[#allocation4 + $0x4] sm:$0xf] }
 0x29d   : > { %3813 = vmatmul.mubr.msk.bf16.vlgmr.msra.gmra.mxu0 %vm1820_vm1, %v1807_v54  ;;  %3819 = vmatmul.mubr.msk.bf16.vlgmr.msra.gmra.mxu1 %vm1820_vm1, %v1808_v55 }
 0x29e   : > { %3823 = vmatpush3.bf16.xpose.msra.mxu0 %v1935_v56  ;;  %3829 = vmatpush3.bf16.xpose.msra.mxu1 %v1981_v57 }
 0x29f   : > { %3824 = vmatprep.mubr.msk.bf16.mxu0 %vm4209_vm0, %v4208_v4  ;;  %3830 = vmatprep.mubr.msk.bf16.mxu1 %vm4209_vm0, %v4208_v4 }
 0x2a0   : > { %3834 = vmatprep.subr.bf16.mxu0 %v4208_v4  ;;  %3840 = vmatprep.subr.bf16.mxu1 %v4208_v4 }
 0x2b2   : > { %v1690_v58 = vpop.f32.mrf.mxu0  ;;  %v1798_v59 = vpop.f32.mrf.mxu1 }
 0x2b3   : > { %v1696_v60 = vpack.c.bf16 %v1690_v58, %v1690_v58  ;;  %v1804_v61 = vpack.c.bf16 %v1798_v59, %v1798_v59 }
 0x2b4   : > { %v3788_v62 = vpop.f32.mrf.mxu0  ;;  %v3808_v63 = vpop.f32.mrf.mxu1 }
 0x2b5   : > { %1698 = vst.msk [vmem:[#allocation4 + $0x8] sm:$0xf] %vm590_vm2, %v1696_v60  ;;  %1806 = vst.msk [vmem:[#allocation4 + $0xc] sm:$0xf] %vm590_vm2, %v1804_v61  ;;  %v1838_v63 = vld [vmem:[#allocation3 + $0xc] sm:$0xf] }
 0x2b6   : > { %v1693_v0 = vpop.f32.mrf.mxu0  ;;  %v1801_v1 = vpop.f32.mrf.mxu1 }
 0x2b8   : > { %v3789_v2 = vpop.f32.mrf.mxu0  ;;  %v3809_v3 = vpop.f32.mrf.mxu1 }
 0x2b9   : > { %v1837_v3 = vld [vmem:[#allocation3 + $0x8] sm:$0xf] }
 0x2bc   : > { %v1809_v7 = vld [vmem:[#allocation4 + $0x8] sm:$0xf]  ;;  %v1810_v8 = vld [vmem:[#allocation4 + $0xc] sm:$0xf] }
 0x2bd   : > { %3825 = vmatmul.mubr.msk.bf16.vlgmr.msra.gmra.mxu0 %vm1820_vm1, %v1809_v7  ;;  %3831 = vmatmul.mubr.msk.bf16.vlgmr.msra.gmra.mxu1 %vm1820_vm1, %v1810_v8  ;;  %v2296_v7 = vsel %vm2156_vm3, %v1838_v63, 0  ;;  %v2250_v8 = vsel %vm2156_vm3, %v1837_v3, 0 }
 0x2be   : > { %3835 = vmatpush3.bf16.msra.mxu0 %v2158_v9  ;;  %3841 = vmatpush3.bf16.msra.mxu1 %v2204_v10 }
 0x2bf   : > { %3836 = vmatprep.mubr.msk.bf16.mxu0 %vm4209_vm0, %v4208_v4  ;;  %3842 = vmatprep.mubr.msk.bf16.mxu1 %vm4209_vm0, %v4208_v4 }
 0x2c0   : > { %3846 = vmatprep.subr.bf16.mxu0 %v4208_v4  ;;  %3852 = vmatprep.subr.bf16.mxu1 %v4208_v4 }
 0x35d   : > { %v1879_v15 = vpop.f32.mrf.mxu0  ;;  %v1925_v16 = vpop.f32.mrf.mxu1 }
 0x35e   : > { %v2024_v17 = vsel %vm2023_vm5, -1e+30, %v1879_v15  ;;  %v2025_v18 = vsel %vm2023_vm5, -1e+30, %v1925_v16 }
 0x35f   : > { %v3814_v19 = vpop.f32.mrf.mxu0  ;;  %v3820_v20 = vpop.f32.mrf.mxu1  ;;  %v2036_v21 = vsel %vm2032_vm6, %v2025_v18, -inf  ;;  %v2033_v22 = vsel %vm2032_vm6, %v2024_v17, -inf }
 0x360   : > { %2037 = vmax.xlane.f32.xlu1 %v2036_v21  ;;  %2034 = vmax.xlane.f32.xlu0 %v2033_v22 }
 0x361   : > { %v1882_v23 = vpop.f32.mrf.mxu0  ;;  %v1928_v24 = vpop.f32.mrf.mxu1 }
 0x363   : > { %v3815_v25 = vpop.f32.mrf.mxu0  ;;  %v3821_v26 = vpop.f32.mrf.mxu1 }
 0x37d   : > { %v1971_v28 = vpop.f32.mrf.mxu0  ;;  %v2017_v29 = vpop.f32.mrf.mxu1 }
 0x37e   : > { %v4849_v30 = vsel %vm2023_vm5, -1e+30, %v1971_v28  ;;  %v4853_v31 = vsel %vm2023_vm5, -1e+30, %v2017_v29 }
 0x37f   : > { %v3826_v32 = vpop.f32.mrf.mxu0  ;;  %v3832_v33 = vpop.f32.mrf.mxu1  ;;  %v2042_v34 = vsel %vm2032_vm6, %v4853_v31, -inf  ;;  %v2039_v35 = vsel %vm2032_vm6, %v4849_v30, -inf }
 0x380   : > { %2043 = vmax.xlane.f32.xlu1 %v2042_v34  ;;  %2040 = vmax.xlane.f32.xlu0 %v2039_v35  ;;  %v4048_v32 = vld [vmem:[%s5118_s6 + $0x8] sm:$0xff]   ;;  %v2094_v33 = vld [vmem:[#allocation6 + $0x8] sm:$0xff]  ;;  %v2093_v34 = vld [vmem:[#allocation6] sm:$0xff] }
 0x381   : > { %v1974_v36 = vpop.f32.mrf.mxu0  ;;  %v2020_v37 = vpop.f32.mrf.mxu1 }
 0x383   : > { %v3827_v38 = vpop.f32.mrf.mxu0  ;;  %v3833_v39 = vpop.f32.mrf.mxu1 }
 0x3e9   : > { %v2038_v43 = vpop.xlane.xlu1 %2037  ;;  %v2035_v44 = vpop.xlane.xlu0 %2034 }
 0x3ea   : > { %v4862_v45 = vmax.f32 %v4859_v41, %v2038_v43  ;;  %v2045_v46 = vmax.f32 %v2028_v42, %v2035_v44  ;;  %v4049_v44 = vld [vmem:[%s5118_s6 + $0x10] sm:$0xff]  }
 0x3ec   : > { %v2050_v47 = vsub.f32 %v4859_v41, %v4862_v45  ;;  %2347 = vst.msk [vmem:[#allocation5 + $0x8] sm:$0xff] %vm1811_vm4, %v4862_v45  ;;  %v2049_v48 = vsub.f32 %v2028_v42, %v2045_v46  ;;  %2346 = vst.msk [vmem:[#allocation5] sm:$0xff] %vm1811_vm4, %v2045_v46  ;;  %2068 = vperm.xlu1 %3950, %v4862_v45   ;;  %2063 = vperm.xlu0 %3949, %v2045_v46   ;;  %v4050_v45 = vld [vmem:[%s5118_s6] sm:$0xff]  }
 0x3ee   : > { %v2053_v9 = vmul.f32 1.442695, %v2049_v48  ;;  %v2055_v22 = vmul.f32 1.442695, %v2050_v47  ;;  %v2095_v48 = vld [vmem:[#allocation6 + $0x10] sm:$0xff] }
 0x409   : > { %v2044_v50 = vpop.xlane.xlu1 %2043  ;;  %v2041_v51 = vpop.xlane.xlu0 %2040 }
 0x40a   : > { %v4875_v52 = vmax.f32 %v4870_v49, %v2044_v50  ;;  %v2047_v53 = vmax.f32 %v4872_v40, %v2041_v51  ;;  %v2096_v50 = vld [vmem:[#allocation6 + $0x18] sm:$0xff] }
 0x40c   : > { %v2052_v54 = vsub.f32 %v4870_v49, %v4875_v52  ;;  %2349 = vst.msk [vmem:[#allocation5 + $0x18] sm:$0xff] %vm1811_vm4, %v4875_v52  ;;  %v2051_v55 = vsub.f32 %v4872_v40, %v2047_v53  ;;  %2348 = vst.msk [vmem:[#allocation5 + $0x10] sm:$0xff] %vm1811_vm4, %v2047_v53  ;;  %2073 = vperm.xlu1 %3950, %v2047_v53  }
 0x40e   : > { %v2057_v25 = vmul.f32 1.442695, %v2051_v55  ;;  %v2059_v26 = vmul.f32 1.442695, %v2052_v54 }
 0x410   : > { %2078 = vperm.xlu1 %3950, %v4875_v52  }
 0x467   : > { %v2069_v56 = vpop.permute.xlu1 %2068  ;;  %v2064_v57 = vpop.permute.xlu0 %2063 }
 0x468   : > { %v2082_v58 = vsub.f32 %v2025_v18, %v2069_v56  ;;  %v2081_v59 = vsub.f32 %v2024_v17, %v2064_v57  ;;  %v2122_v57 = vld [vmem:[#allocation7 + $0x8] sm:$0xff] }
 0x46a   : > { %v2087_v60 = vmul.f32 1.442695, %v2082_v58  ;;  %v2085_v61 = vmul.f32 1.442695, %v2081_v59  ;;  %v2121_v59 = vld [vmem:[#allocation7] sm:$0xff] }
 0x46c   : > { %4099 = vpow2.f32 %v2087_v60 }
 0x46d   : > { %4101 = vpow2.f32 %v2085_v61 }
 0x46e   : > { %4103 = vpow2.f32 %v2053_v9 }
 0x479   : > { %v4100_v62 = vpop.eup %4099 }
 0x47a   : > { %v4102_v0 = vpop.eup %4101  ;;  %v2104_v1 = vsel %vm2032_vm6, %v4100_v62, 0.0  ;;  %v2150_v2 = vpack.c.bf16 %v4100_v62, %v4100_v62 }
 0x47b   : > { %2105 = vadd.xlane.f32.xlu1 %v2104_v1  ;;  %v2101_v5 = vsel %vm2032_vm6, %v4102_v0, 0.0  ;;  %v2149_v6 = vpack.c.bf16 %v4102_v0, %v4102_v0  ;;  %v4104_v17 = vpop.eup %4103 }
 0x47c   : > { %2102 = vadd.xlane.f32.xlu0 %v2101_v5  ;;  %3843 = vmatmul.mubr.msk.bf16.vlgmr.msra.gmra.mxu1 %vm2032_vm6, %v2150_v2  ;;  %v2097_v37 = vmul.f32 %v4104_v17, %v2093_v34 }
 0x47d   : > { %3837 = vmatmul.mubr.msk.bf16.vlgmr.msra.gmra.mxu0 %vm2032_vm6, %v2149_v6  ;;  %3853 = vmatpush3.bf16.msra.mxu1 %v2296_v7 }
 0x47e   : > { %3847 = vmatpush3.bf16.msra.mxu0 %v2250_v8  ;;  %3848 = vmatprep.mubr.msk.bf16.mxu0 %vm4209_vm0, %v4208_v4 }
 0x47f   : > { %3854 = vmatprep.mubr.msk.bf16.mxu1 %vm4209_vm0, %v4208_v4  ;;  %3858 = vmatprep.subr.bf16.mxu0 %v4208_v4 }
 0x480   : > { %3866 = vmatprep.subr.bf16.mxu1 %v4208_v4 }
 0x487   : > { %v2074_v10 = vpop.permute.xlu1 %2073 }
 0x488   : > { %v2083_v11 = vsub.f32 %v4849_v30, %v2074_v10 }
 0x48a   : > { %v2089_v12 = vmul.f32 1.442695, %v2083_v11 }
 0x48b   : > { %v2079_v14 = vpop.permute.xlu1 %2078 }
 0x48c   : > { %4105 = vpow2.f32 %v2089_v12  ;;  %v2084_v15 = vsub.f32 %v4853_v31, %v2079_v14  ;;  %v4047_v31 = vld [vmem:[%s5118_s6 + $0x18] sm:$0xff]   ;;  %v2123_v14 = vld [vmem:[#allocation7 + $0x10] sm:$0xff] }
 0x48e   : > { %v2091_v16 = vmul.f32 1.442695, %v2084_v15 }
 0x490   : > { %4107 = vpow2.f32 %v2091_v16  ;;  %v2124_v16 = vld [vmem:[#allocation7 + $0x18] sm:$0xff] }
 0x491   : > { %4109 = vpow2.f32 %v2055_v22 }
 0x492   : > { %2127 = vperm.xlu0 %3949, %v4104_v17   ;;  %4111 = vpow2.f32 %v2057_v25 }
 0x493   : > { %4113 = vpow2.f32 %v2059_v26 }
 0x499   : > { %v4106_v18 = vpop.eup %4105 }
 0x49a   : > { %v2107_v19 = vsel %vm2032_vm6, %v4106_v18, 0.0  ;;  %v2151_v20 = vpack.c.bf16 %v4106_v18, %v4106_v18 }
 0x49b   : > { %2108 = vadd.xlane.f32.xlu1 %v2107_v19 }
 0x49c   : > { %3849 = vmatmul.mubr.msk.bf16.vlgmr.msra.gmra.mxu0 %vm2032_vm6, %v2151_v20 }
 0x49d   : > { %v4108_v21 = vpop.eup %4107  ;;  %3862 = vmatprep.mubr.msk.bf16.mxu0 %vm4209_vm0, %v4208_v4  ;;  %3859 = vmatpush3.bf16.msra.mxu0 %v4047_v31 }
 0x49e   : > { %v2110_v23 = vsel %vm2032_vm6, %v4108_v21, 0.0  ;;  %v2152_v24 = vpack.c.bf16 %v4108_v21, %v4108_v21  ;;  %v4110_v28 = vpop.eup %4109  ;;  %3860 = vmatprep.subr.bf16.mxu0 %v4208_v4 }
 0x49f   : > { %2111 = vadd.xlane.f32.xlu1 %v2110_v23  ;;  %v4112_v29 = vpop.eup %4111  ;;  %v2098_v35 = vmul.f32 %v4110_v28, %v2094_v33 }
 0x4a0   : > { %3855 = vmatmul.mubr.msk.bf16.vlgmr.msra.gmra.mxu1 %vm2032_vm6, %v2152_v24  ;;  %v4114_v30 = vpop.eup %4113  ;;  %v2099_v49 = vmul.f32 %v4112_v29, %v2095_v48 }
 0x4a1   : > { %3870 = vmatprep.mubr.msk.bf16.mxu1 %vm4209_vm0, %v4208_v4  ;;  %3867 = vmatpush3.bf16.msra.mxu1 %v4048_v32  ;;  %v2100_v52 = vmul.f32 %v4114_v30, %v2096_v50 }
 0x4a2   : > { %3868 = vmatprep.subr.bf16.mxu1 %v4208_v4  ;;  %3861 = vmatpush3.bf16.msra.mxu0 %v4049_v44 }
 0x4a3   : > { %3874 = vmatprep.subr.bf16.mxu0 %v4208_v4 }
 0x4a5   : > { %3869 = vmatpush3.bf16.msra.mxu1 %v4050_v45 }
 0x4a6   : > { %3882 = vmatprep.subr.bf16.mxu1 %v4208_v4 }
 0x4b0   : > { %2132 = vperm.xlu1 %3950, %v4110_v28  }
 0x4b4   : > { %2137 = vperm.xlu1 %3950, %v4112_v29  }
 0x4b8   : > { %2142 = vperm.xlu1 %3950, %v4114_v30  }
 0x504   : > { %v2106_v36 = vpop.xlane.xlu1 %2105 }
 0x505   : > { %v2114_v38 = vadd.f32 %v2106_v36, %v2098_v35  ;;  %v2103_v39 = vpop.xlane.xlu0 %2102  ;;  %v4051_v36 = vld [vmem:[%s5118_s6 + $0x28] sm:$0xff]  }
 0x506   : > { %v2113_v41 = vadd.f32 %v2103_v39, %v2097_v37 }
 0x507   : > { %2118 = vst.msk [vmem:[#allocation6 + $0x8] sm:$0xff] %vm1811_vm4, %v2114_v38  ;;  %v4052_v38 = vld [vmem:[%s5118_s6 + $0x38] sm:$0xff]  }
 0x508   : > { %2117 = vst.msk [vmem:[#allocation6] sm:$0xff] %vm1811_vm4, %v2113_v41  ;;  %v4053_v41 = vld [vmem:[%s5118_s6 + $0x20] sm:$0xff]  }
 0x50d   : > { %v2128_v60 = vpop.permute.xlu0 %2127 }
 0x50e   : > { %v2355_v42 = vld [vmem:[#allocation6 + $0x8] sm:$0xff]  ;;  %v2145_v63 = vmul.f32 %v2128_v60, %v2121_v59 }
 0x50f   : > { %4115 = vrcp.f32 %v2355_v42  ;;  %v2354_v43 = vld [vmem:[#allocation6] sm:$0xff] }
 0x510   : > { %4117 = vrcp.f32 %v2354_v43  ;;  %v4054_v42 = vld [vmem:[%s5118_s6 + $0x30] sm:$0xff]  }
 0x51c   : > { %v4116_v46 = vpop.eup %4115 }
 0x51d   : > { %v4118_v47 = vpop.eup %4117  ;;  %2369 = vperm.xlu1 %3950, %v4116_v46  }
 0x51e   : > { %2364 = vperm.xlu0 %3949, %v4118_v47  }
 0x524   : > { %v2109_v40 = vpop.xlane.xlu1 %2108 }
 0x525   : > { %v2115_v51 = vadd.f32 %v2109_v40, %v2099_v49 }
 0x527   : > { %2119 = vst.msk [vmem:[#allocation6 + $0x10] sm:$0xff] %vm1811_vm4, %v2115_v51 }
 0x528   : > { %v2112_v53 = vpop.xlane.xlu1 %2111 }
 0x529   : > { %v2116_v54 = vadd.f32 %v2112_v53, %v2100_v52 }
 0x52b   : > { %2120 = vst.msk [vmem:[#allocation6 + $0x18] sm:$0xff] %vm1811_vm4, %v2116_v54 }
 0x52c   : > { %v2133_v58 = vpop.permute.xlu1 %2132 }
 0x52d   : > { %v2146_v61 = vmul.f32 %v2133_v58, %v2122_v57 }
 0x52e   : > { %v2356_v55 = vld [vmem:[#allocation6 + $0x10] sm:$0xff] }
 0x52f   : > { %4119 = vrcp.f32 %v2356_v55 }
 0x530   : > { %v2138_v12 = vpop.permute.xlu1 %2137 }
 0x531   : > { %v2147_v15 = vmul.f32 %v2138_v12, %v2123_v14 }
 0x532   : > { %v2357_v56 = vld [vmem:[#allocation6 + $0x18] sm:$0xff] }
 0x533   : > { %4121 = vrcp.f32 %v2357_v56 }
 0x534   : > { %v2143_v17 = vpop.permute.xlu1 %2142 }
 0x535   : > { %v2148_v21 = vmul.f32 %v2143_v17, %v2124_v16  ;;  %v4061_v16 = vld [vmem:[%s5121_s9 + $0x50] ss:$8 sps:$4 sm:$0xff]   ;;  %v4066_v17 = vld [vmem:[%s5121_s9 + $0x44] ss:$8 sps:$4 sm:$0xff]  }
 0x53c   : > { %v4120_v62 = vpop.eup %4119  ;;  %v2240_v0 = vpop.f32.mrf.mxu1 }
 0x53d   : > { %v2194_v1 = vpop.f32.mrf.mxu0  ;;  %v2339_v2 = vadd.f32 %v2240_v0, %v2146_v61  ;;  %2374 = vperm.xlu1 %3950, %v4120_v62  }
 0x53e   : > { %v2338_v3 = vadd.f32 %v2194_v1, %v2145_v63  ;;  %v3844_v5 = vpop.f32.mrf.mxu1  ;;  %v4129_v1 = vld [vmem:[%s4343_s15] sm:$0xff]  ;;  %s4212_s15 = smov [#allocation8]  }
 0x53f   : > { %2343 = vst.msk [vmem:[#allocation7 + $0x8] sm:$0xff] %vm1820_vm1, %v2339_v2  ;;  %v3838_v6 = vpop.f32.mrf.mxu0  ;;  %s4134_s28 = sshll.u32 %s4212_s15, 4  ;;  %s4135_s28 = int_to_ptr.vmem [resolvable:$false] %s4134_s28 }
 0x540   : > { %v4122_v7 = vpop.eup %4121  ;;  %2342 = vst.msk [vmem:[#allocation7] sm:$0xff] %vm1820_vm1, %v2338_v3  ;;  %v2243_v8 = vpop.f32.mrf.mxu1  ;;  %v4055_v6 = vld [vmem:[%s5121_s9 + $0x70] ss:$8 sps:$4 sm:$0xff]   ;;  %s4136_s23 = scalar_lea.vmem %s4135_s28, 256  ;;  %p4137_p1 = scmp.lt.s32.totalorder %s3023_s21, %s4135_s28 }
 0x541   : > { %v2197_v9 = vpop.f32.mrf.mxu0  ;;  %2379 = vperm.xlu0 %3949, %v4122_v7   ;;  %v4057_v7 = vld [vmem:[%s5121_s9 + $0x74] ss:$8 sps:$4 sm:$0xff]   ;;  %v4060_v8 = vld [vmem:[%s5121_s9 + $0x64] ss:$8 sps:$4 sm:$0xff]   ;;  %p4138_p2 = scmp.lt.s32.totalorder %s4136_s23, %s4130_s0 }
 0x542   : > { %v3845_v10 = vpop.f32.mrf.mxu1  ;;  %v4058_v9 = vld [vmem:[%s5121_s9 + $0x60] ss:$8 sps:$4 sm:$0xff]  }
 0x543   : > { %v3839_v11 = vpop.f32.mrf.mxu0  ;;  %p4139_p3 = por %p4138_p2, %p4137_p1 }
 0x545   : > { %p4140_p5 = pnand %p4139_p3, %p4133_p0 }
 0x546   : > { %v2351_v30 = vld [vmem:[#allocation7 + $0x8] sm:$0xff] }
 0x547   : > { %v2350_v34 = vld [vmem:[#allocation7] sm:$0xff] }
 0x55c   : > { %v2286_v18 = vpop.f32.mrf.mxu0 }
 0x55d   : > { %v2340_v19 = vadd.f32 %v2286_v18, %v2147_v15  ;;  %v4063_v15 = vld [vmem:[%s5121_s9 + $0x54] ss:$8 sps:$4 sm:$0xff]   ;;  %v4064_v18 = vld [vmem:[%s5121_s9 + $0x40] ss:$8 sps:$4 sm:$0xff]  }
 0x55e   : > { %v3850_v20 = vpop.f32.mrf.mxu0 }
 0x55f   : > { %2344 = vst.msk [vmem:[#allocation7 + $0x10] sm:$0xff] %vm1820_vm1, %v2340_v19  ;;  %v4069_v19 = vld [vmem:[%s5121_s9 + $0x34] ss:$8 sps:$4 sm:$0xff]   ;;  %v4067_v20 = vld [vmem:[%s5121_s9 + $0x30] ss:$8 sps:$4 sm:$0xff]  }
 0x560   : > { %v2289_v22 = vpop.f32.mrf.mxu0  ;;  %v2332_v23 = vpop.f32.mrf.mxu1 }
 0x561   : > { %v2341_v24 = vadd.f32 %v2332_v23, %v2148_v21  ;;  %v4072_v21 = vld [vmem:[%s5121_s9 + $0x24] ss:$8 sps:$4 sm:$0xff]   ;;  %v4070_v22 = vld [vmem:[%s5121_s9 + $0x20] ss:$8 sps:$4 sm:$0xff]   ;;  %v4075_v23 = vld [vmem:[%s5121_s9 + $0x14] ss:$8 sps:$4 sm:$0xff]  }
 0x562   : > { %v3851_v25 = vpop.f32.mrf.mxu0  ;;  %v3856_v26 = vpop.f32.mrf.mxu1 }
 0x563   : > { %2345 = vst.msk [vmem:[#allocation7 + $0x18] sm:$0xff] %vm1820_vm1, %v2341_v24  ;;  %v4073_v24 = vld [vmem:[%s5121_s9 + $0x10] ss:$8 sps:$4 sm:$0xff]   ;;  %v4078_v25 = vld [vmem:[%s5121_s9 + $0x4] ss:$8 sps:$4 sm:$0xff]  }
 0x564   : > { %v2335_v28 = vpop.f32.mrf.mxu1  ;;  %v4076_v26 = vld [vmem:[%s5121_s9] ss:$8 sps:$4 sm:$0xff]  }
 0x566   : > { %v3857_v29 = vpop.f32.mrf.mxu1  ;;  %v2352_v44 = vld [vmem:[#allocation7 + $0x10] sm:$0xff] }
 0x56a   : > { %v2353_v47 = vld [vmem:[#allocation7 + $0x18] sm:$0xff] }
 0x598   : > { %v2370_v31 = vpop.permute.xlu1 %2369 }
 0x599   : > { %v2383_v32 = vmul.f32 %v2370_v31, %v2351_v30  ;;  %v2365_v33 = vpop.permute.xlu0 %2364 }
 0x59a   : > { %v2382_v35 = vmul.f32 %v2365_v33, %v2350_v34  ;;  %v3372_v34 = vld [vmem:[%s5120_s8] ss:$0 sm:$0xff] }
 0x59b   : > { %v2391_v37 = vpack.c.bf16 %v2383_v32, %v2383_v32  ;;  %v3371_v32 = vld [vmem:[%s5119_s7] ss:$0 sm:$0xff] }
 0x59c   : > { %v2386_v39 = vpack.c.bf16 %v2382_v35, %v2382_v35 }
 0x59d   : > { %3863 = vmatmul.mubr.msk.bf16.vlgmr.msra.gmra.mxu0 %vm1820_vm1, %v2391_v37 }
 0x59e   : > { %3871 = vmatmul.mubr.msk.bf16.vlgmr.msra.gmra.mxu1 %vm1820_vm1, %v2386_v39  ;;  %3875 = vmatpush3.bf16.msra.mxu0 %v4051_v36  ;;  %v4080_v39 = vld [vmem:[%s5123_s11 + $0x38] sm:$0xff]  }
 0x59f   : > { %3876 = vmatprep.subr.bf16.mxu0 %v4208_v4  ;;  %3883 = vmatpush3.bf16.msra.mxu1 %v4052_v38  ;;  %v4079_v38 = vld [vmem:[%s5123_s11 + $0x78] sm:$0xff]  }
 0x5a0   : > { %3878 = vmatprep.mubr.msk.bf16.mxu0 %vm4209_vm0, %v4208_v4  ;;  %3884 = vmatprep.subr.bf16.mxu1 %v4208_v4 }
 0x5a1   : > { %3886 = vmatprep.mubr.msk.bf16.mxu1 %vm4209_vm0, %v4208_v4 }
 0x5a2   : > { %3877 = vmatpush3.bf16.msra.mxu0 %v4053_v41  ;;  %v4081_v41 = vld [vmem:[%s5123_s11 + $0x70] sm:$0xff]  }
 0x5a3   : > { %3885 = vmatpush3.bf16.msra.mxu1 %v4054_v42  ;;  %2768 = vmatprep.subr.bf16.mxu0 %v4057_v7  ;;  %v4082_v42 = vld [vmem:[%s5123_s11 + $0x30] sm:$0xff]  }
 0x5a4   : > { %3548 = vmatprep.subr.bf16.mxu1 %v4079_v38 }
 0x5b8   : > { %v2375_v43 = vpop.permute.xlu1 %2374 }
 0x5b9   : > { %v2384_v45 = vmul.f32 %v2375_v43, %v2352_v44  ;;  %v4083_v43 = vld [vmem:[%s5123_s11 + $0x68] sm:$0xff]  }
 0x5ba   : > { %v4084_v44 = vld [vmem:[%s5123_s11 + $0x28] sm:$0xff]  }
 0x5bb   : > { %v2507_v46 = vpack.c.bf16 %v2384_v45, %v2384_v45  ;;  %v4085_v45 = vld [vmem:[%s5123_s11 + $0x60] sm:$0xff]  }
 0x5bc   : > { %v2380_v48 = vpop.permute.xlu0 %2379 }
 0x5bd   : > { %v2385_v49 = vmul.f32 %v2380_v48, %v2353_v47  ;;  %3879 = vmatmul.mubr.msk.bf16.vlgmr.msra.gmra.mxu0 %vm1820_vm1, %v2507_v46  ;;  %v4086_v46 = vld [vmem:[%s5123_s11 + $0x20] sm:$0xff]   ;;  %v4087_v47 = vld [vmem:[%s5123_s11 + $0x58] sm:$0xff]  }
 0x5be   : > { %2800 = vmatprep.mubr.bf16.mxu0 %v4211_v27  ;;  %2769 = vmatpush1.bf16.msra.mxu0 %v4055_v6  ;;  %v4088_v48 = vld [vmem:[%s5123_s11 + $0x18] sm:$0xff]  }
 0x5bf   : > { %v2569_v40 = vpack.c.bf16 %v2385_v49, %v2385_v49  ;;  %2770 = vmatprep.subr.bf16.mxu0 %v4060_v8  ;;  %v4089_v49 = vld [vmem:[%s5123_s11 + $0x50] sm:$0xff]  }
 0x5c1   : > { %3887 = vmatmul.mubr.msk.bf16.vlgmr.msra.gmra.mxu1 %vm1820_vm1, %v2569_v40  ;;  %v4090_v40 = vld [vmem:[%s5123_s11 + $0x10] sm:$0xff]  }
 0x5c2   : > { %2771 = vmatpush1.bf16.msra.mxu0 %v4058_v9  ;;  %3549 = vmatpush3.bf16.msra.mxu1 %v4080_v39 }
 0x5c3   : > { %2772 = vmatprep.subr.bf16.mxu0 %v4063_v15  ;;  %3550 = vmatprep.subr.bf16.mxu1 %v4081_v41 }
 0x5c6   : > { %2773 = vmatpush1.bf16.msra.mxu0 %v4061_v16  ;;  %3551 = vmatpush3.bf16.msra.mxu1 %v4082_v42 }
 0x5c7   : > { %2774 = vmatprep.subr.bf16.mxu0 %v4066_v17  ;;  %3552 = vmatprep.subr.bf16.mxu1 %v4083_v43 }
 0x5ca   : > { %2775 = vmatpush1.bf16.msra.mxu0 %v4064_v18  ;;  %3553 = vmatpush3.bf16.msra.mxu1 %v4084_v44 }
 0x5cb   : > { %2776 = vmatprep.subr.bf16.mxu0 %v4069_v19  ;;  %3554 = vmatprep.subr.bf16.mxu1 %v4085_v45 }
 0x5ce   : > { %2777 = vmatpush1.bf16.msra.mxu0 %v4067_v20  ;;  %3555 = vmatpush3.bf16.msra.mxu1 %v4086_v46 }
 0x5cf   : > { %2778 = vmatprep.subr.bf16.mxu0 %v4072_v21  ;;  %3556 = vmatprep.subr.bf16.mxu1 %v4087_v47 }
 0x5d2   : > { %2779 = vmatpush1.bf16.msra.mxu0 %v4070_v22  ;;  %3557 = vmatpush3.bf16.msra.mxu1 %v4088_v48 }
 0x5d3   : > { %2780 = vmatprep.subr.bf16.mxu0 %v4075_v23  ;;  %3558 = vmatprep.subr.bf16.mxu1 %v4089_v49 }
 0x5d6   : > { %2781 = vmatpush1.bf16.msra.mxu0 %v4073_v24  ;;  %3559 = vmatpush3.bf16.msra.mxu1 %v4090_v40  ;;  %v3405_v24 = vld [vmem:[%s5124_s12] ss:$0 sm:$0xff] }
 0x5d7   : > { %2782 = vmatprep.subr.bf16.mxu0 %v4078_v25 }
 0x5da   : > { %2783 = vmatpush1.bf16.msra.mxu0 %v4076_v26 }
 0x65d   : > { %v2446_v50 = vpop.f32.mrf.mxu0 }
 0x65e   : > { %v2501_v51 = vpop.f32.mrf.mxu1 }
 0x65f   : > { %v3864_v4 = vpop.f32.mrf.mxu0  ;;  %v2502_v58 = vadd.f32 %v2501_v51, %v2446_v50  ;;  %v4091_v50 = vld [vmem:[%s5123_s11 + $0x48] sm:$0xff]  }
 0x660   : > { %v3872_v52 = vpop.f32.mrf.mxu1  ;;  %v4092_v51 = vld [vmem:[%s5123_s11 + $0x8] sm:$0xff]   ;;  %3560 = vmatprep.subr.bf16.mxu1 %v4091_v50  ;;  %v4093_v4 = vld [vmem:[%s5123_s11 + $0x40] sm:$0xff]  }
 0x661   : > { %v2449_v53 = vpop.f32.mrf.mxu0  ;;  %3561 = vmatpush3.bf16.msra.mxu1 %v4092_v51  ;;  %v4094_v52 = vld [vmem:[%s5123_s11] sm:$0xff]  }
 0x662   : > { %v2504_v54 = vpop.f32.mrf.mxu1  ;;  %3562 = vmatprep.subr.bf16.mxu1 %v4093_v4  ;;  %v473_v53 = vsub.s32 0, %v4836_v13 }
 0x663   : > { %v3865_v55 = vpop.f32.mrf.mxu0  ;;  %v2676_v54 = vld [vmem:[%s5122_s10] sm:$0x3] }
 0x664   : > { %v3873_v56 = vpop.f32.mrf.mxu1  ;;  %v2684_v55 = vsub.s32 1, %v4836_v13 }
 0x665   : > { %3563 = vmatpush3.bf16.msra.mxu1 %v4094_v52  ;;  %v2681_v56 = vrot.slane %v2676_v54, %v473_v53 }
 0x67d   : > { %v2562_v57 = vpop.f32.mrf.mxu0 }
 0x67e   : > { %v2568_v60 = vadd.f32 %v2562_v57, %v2502_v58  ;;  %v2685_v57 = vrot.slane %v2676_v54, %v2684_v55 }
 0x67f   : > { %v3880_v59 = vpop.f32.mrf.mxu0 }
 0x681   : > { %v2565_v61 = vpop.f32.mrf.mxu0  ;;  %v2624_v62 = vpop.f32.mrf.mxu1 }
 0x682   : > { %v2630_v63 = vadd.f32 %v2624_v62, %v2568_v60 }
 0x683   : > { %v3881_v27 = vpop.f32.mrf.mxu0  ;;  %v3888_v0 = vpop.f32.mrf.mxu1 }
 0x684   : > { %v4958_v2 = vadd.f32 %v4129_v1, %v2630_v63 }
 0x685   : > { %v2627_v3 = vpop.f32.mrf.mxu1 }
 0x686   : > { %2634 = vadd.xlane.f32.xlu1 %v4958_v2 }
 0x687   : > { %v3889_v5 = vpop.f32.mrf.mxu1 }
 0x70f   : > { %v2635_v10 = vpop.xlane.xlu1 %2634 }
 0x710   : > { %v2636_v11 = vmul.f32 0.0078125, %v2635_v10 }
 0x712   : > { %v2637_v12 = vsub.f32 %v4958_v2, %v2636_v11 }
 0x714   : > { %v2638_v14 = vmul.f32 %v2637_v12, %v2637_v12 }
 0x716   : > { %2639 = vadd.xlane.f32.xlu0 %v2638_v14 }
 0x79f   : > { %v2640_v28 = vpop.xlane.xlu0 %2639 }
 0x7a0   : > { %v2641_v29 = vmul.f32 0.0078125, %v2640_v28 }
 0x7a2   : > { %v2642_v30 = vadd.f32 1e-05, %v2641_v29 }
 0x7a4   : > { %4123 = vrsqrt.f32 %v2642_v30 }
 0x7b1   : > { %v4124_v31 = vpop.eup %4123 }
 0x7b2   : > { %v2644_v33 = vmul.f32 %v4124_v31, %v2637_v12 }
 0x7b4   : > { %v2651_v35 = vmul.f32 %v3371_v32, %v2644_v33 }
 0x7b6   : > { %v2658_v36 = vadd.f32 %v3372_v34, %v2651_v35 }
 0x7b8   : > { %v2659_v37 = vpack.c.bf16 %v2658_v36, %v2658_v36 }
 0x7ba   : > { %2801 = vmatmul.mubr.bf16.vlgmr.msra.gmra.mxu0 %v2659_v37 }
 0x87a   : > { %v2802_v58 = vpop.f32.mrf.mxu0 }
 0x87b   : > { %v2803_v59 = vadd.f32 %v2802_v58, %v2681_v56 }
 0x87c   : > { %v2804_v60 = vpop.f32.mrf.mxu0 }
 0x87d   : > { %v2811_v61 = vmul.f32 %v2803_v59, %v2803_v59  ;;  %v2805_v62 = vadd.f32 %v2804_v60, %v2685_v57  ;;  %v2809_v14 = vmul.f32 0.5, %v2803_v59 }
 0x87e   : > { %v2806_v63 = vpop.f32.mrf.mxu0 }
 0x87f   : > { %v2813_v27 = vmul.f32 %v2811_v61, %v2803_v59  ;;  %v2812_v0 = vmul.f32 %v2805_v62, %v2805_v62  ;;  %v2810_v15 = vmul.f32 0.5, %v2805_v62 }
 0x880   : > { %v2807_v1 = vpop.f32.mrf.mxu0 }
 0x881   : > { %v2815_v3 = vmul.f32 0.044715, %v2813_v27  ;;  %v2814_v5 = vmul.f32 %v2812_v0, %v2805_v62 }
 0x883   : > { %v2817_v6 = vadd.f32 %v2815_v3, %v2803_v59  ;;  %v2816_v7 = vmul.f32 0.044715, %v2814_v5 }
 0x885   : > { %v2819_v8 = vmul.f32 0.7978846, %v2817_v6  ;;  %v2818_v9 = vadd.f32 %v2816_v7, %v2805_v62 }
 0x887   : > { %4125 = vtanh.f32 %v2819_v8  ;;  %v2820_v13 = vmul.f32 0.7978846, %v2818_v9 }
 0x889   : > { %4127 = vtanh.f32 %v2820_v13 }
 0x894   : > { %v4126_v10 = vpop.eup %4125 }
 0x895   : > { %v2823_v11 = vadd.f32 1.0, %v4126_v10 }
 0x896   : > { %v4128_v12 = vpop.eup %4127 }
 0x897   : > { %v2824_v16 = vadd.f32 1.0, %v4128_v12  ;;  %v2825_v17 = vmul.f32 %v2823_v11, %v2809_v14 }
 0x899   : > { %v2826_v18 = vmul.f32 %v2824_v16, %v2810_v15  ;;  %v2827_v20 = vpack.c.bf16 %v2825_v17, %v2825_v17 }
 0x89b   : > { %v2828_v19 = vpack.c.bf16 %v2826_v18, %v2826_v18 }
 0x89d   : > { %2989 = vmatprep.mubr.bf16.mxu1 %v2828_v19 }
 0x89e   : > { %2990 = vmatmul.mubr.bf16.vlgmr.msra.gmra.mxu1 %v2827_v20 }
 0x95e   : > { %v3564_v21 = vpop.f32.mrf.mxu1 }
 0x960   : > { %v3565_v22 = vpop.f32.mrf.mxu1 }
 0x961   : > { %v3566_v23 = vadd.f32 %v3565_v22, %v3564_v21 }
 0x962   : > { %v3567_v25 = vpop.f32.mrf.mxu1 }
 0x963   : > { %v2997_v26 = vadd.f32 %v3566_v23, %v4958_v2 }
 0x964   : > { %v3568_v28 = vpop.f32.mrf.mxu1 }
 0x965   : > { %v3005_v29 = vadd.f32 %v3405_v24, %v2997_v26 }
 0x967   : > { %3006 = vst [vmem:[%s445_s16] sm:$0xff] %v3005_v29 }
 0x968   : > { %4143 = shalt.err (!%p4140_p5)
}
 0x969   : > { %s4144_s27 = scalar_lea.hbm %s3020_s19, 128  ;;  %s4148_s16 = scalar_lea.hbm %s5125_s13, 256 }
 0x96a   : > { %p4145_p6 = scmp.ne.s32.totalorder %s3020_s19, %s4144_s27  ;;  %p4149_p10 = scmp.lt.s32.totalorder %s3020_s19, %s5125_s13 }
 0x96b   : > { %p4150_p11 = scmp.lt.s32.totalorder %s4148_s16, %s4144_s27 }
 0x96c   : > { %p4146_p7 = pnand %p4145_p6, %p4323_p4 }
 0x96d   : > { %p4151_p12 = por %p4150_p11, %p4149_p10 }
 0x96e   : > { %p4147_p9 = pneg %p4146_p7 }
 0x970   : > { %p4152_p13 = pnand %p4151_p12, %p4147_p9 }
 0x972   : > { %4155 = shalt.err (!%p4152_p13)
}
 0x973   : > { %3890 = dma.vmem_to_hbm [thread:$0]  (%p4323_p4), %s3023_s21, 128, %s3020_s19, %s3008_s17  }
 0x974 PF: > { %p3896_p0 = scmp.ge.s32.totalorder %s4206_s30, 2  ;;  %s3034_s0 = sand.u32 1, %s4186_s25  }
 0x975   : > { %s3035_s15 = scalar_lea.sflag [#allocation9], %s3034_s0 }
 0x976   : > { %p3893_p1 = pnand %p3896_p0, %p4330_p8 }
 0x978   : > { %p3894_p2 = pneg %p3893_p1 }
 0x97a   : > { %4181 = dma.done.wait (%p3894_p2), %s3035_s15, 128  }
 0x97b   : > { %4183 = vsyncadd (%p3894_p2), %s3035_s15, 4294967168  ;;  %s26_s30 = sadd.s32 1, %s4206_s30   ;;  %s5137_s28 = sld [smem:[#allocation11_spill]] }
 0x97c   : > { %p23_p3 = scmp.ge.s32.totalorder %s26_s30, 4   ;;  %s5138_s27 = sld [smem:[#allocation14_spill]] }
 0x97d   : > { %s5139_s18 = sld [smem:[#allocation12_spill]]  ;;  %s5141_s25 = smov %s4190_s26 }
 0x97e   : > { %s5140_s29 = sld [smem:[#allocation13_spill]] }
 0x97f   :  { %25 = sbr.rel (!%p23_p3) target bundleno = 6 (0x6), region = 133 }
 0x981   : > { %s5142_s26 = smov %s5137_s28 }
 0x983   : > { %s5143_s28 = smov %s5139_s18 }
 0x984   :  { %3040 = vsyncpa [#allocation9], 1 }
 0x985   :  { %3042 = vsyncpa [#allocation9 + $0x1], 1 }

</bundles_post_ra>
